<compile_context>
chip_gen: v7x
topology: tpu7x:2x2x1
jax: 0.10.0
libtpu: 0.0.40
codegen_flags: <defaults>
</compile_context>

<pallas_src>
import jax
import jax.numpy as jnp
from jax.experimental import pallas as pl
from jax.experimental.pallas import tpu as pltpu

NEG_SLOPE = 0.01   # torch.nn.LeakyReLU default
HALO = 8           # (kernel_size - 1) = 6 tail-halo rows, rounded to a sublane group


def _leaky(x):
    return jnp.where(x > 0, x, NEG_SLOPE * x)


def combined_cnn_kernel(xpad_ref, tail_ref,
                        convw_ref, convb_ref,
                        cnnfc_w_ref, cnnfc_b_ref,
                        f1w_ref, f1b_ref, f2w_ref, f2b_ref,
                        c1w_cnn_ref, c1w_fnn_ref, c1b_ref,
                        c2w_ref, c2b_ref,
                        out_ref):
    """One grid step = (batch b, L-tile t) -> one (block_rows, .) output tile.

    xpad_ref : (1, block_rows, D)  rows [t*Br, (t+1)*Br) of the front-shifted
               (padding zero rows prepended) sequence of batch b.
    tail_ref : (1, 1, HALO, D)     the next HALO rows (zeros past sequence end),
               i.e. the conv tail halo for this tile.
    All matmuls accumulate in f32 on the MXU; bias adds / LeakyReLU run in f32;
    activations are cast to the MXU operand dtype only right before each dot
    (no-ops when compute dtype is f32).
    """
    f32 = jnp.float32
    cdt = convw_ref.dtype                        # MXU operand dtype (bf16 / f32)
    K = convw_ref.shape[0]
    pad = (K - 1) // 2
    br = xpad_ref.shape[1]
    C = convw_ref.shape[2]

    xp = xpad_ref[0]                             # (br, D)
    tl = tail_ref[0, 0]                          # (HALO, D)
    # Halo'd tile; slice the K conv taps in f32 (well-supported sublane shifts;
    # a no-op cast in the f32 path), cast each tap back to cdt at the dot.
    xh = jnp.concatenate([xp, tl], axis=0).astype(f32)    # (br + HALO, D)
    taps = [xh[k:k + br] for k in range(K)]               # static shifted slices

    # ---- CNN branch: Conv1d('same') as K accumulated MXU matmuls ------------
    acc = jnp.zeros((br, C), f32)
    for k in range(K):
        acc = acc + jnp.dot(taps[k].astype(cdt), convw_ref[k],
                            preferred_element_type=f32)
    conv = _leaky(acc + convb_ref[...])
    cnn_out = _leaky(jnp.dot(conv.astype(cdt), cnnfc_w_ref[...],
                             preferred_element_type=f32) + cnnfc_b_ref[...])

    # ---- FNN branch: raw x rows == the centre conv tap (no extra input) -----
    x = taps[pad]
    h1 = _leaky(jnp.dot(x.astype(cdt), f1w_ref[...],
                        preferred_element_type=f32) + f1b_ref[...])
    h2 = _leaky(jnp.dot(h1.astype(cdt), f2w_ref[...],
                        preferred_element_type=f32) + f2b_ref[...])

    # ---- Combined head: concat replaced by two matmuls into one accumulator -
    g1 = _leaky(jnp.dot(cnn_out.astype(cdt), c1w_cnn_ref[...],
                        preferred_element_type=f32)
                + jnp.dot(h2.astype(cdt), c1w_fnn_ref[...],
                          preferred_element_type=f32)
                + c1b_ref[...])
    out = jnp.dot(g1.astype(cdt), c2w_ref[...],
                  preferred_element_type=f32) + c2b_ref[...]        # (br, n_pad)
    out_ref[0] = out.astype(out_ref.dtype)       # lane-dense, cast in-kernel


def combined_cnn_forward(x, params, *, kernel_size, padding, output_dim,
                         block_rows=512, compute_dtype=jnp.bfloat16):
    B, L, D = x.shape
    K = kernel_size
    assert 2 * padding == K - 1, "assumes 'same' conv (output length == L)"
    lanes = 128
    n_pad = ((output_dim + lanes - 1) // lanes) * lanes   # lane-dense output
    cdt = compute_dtype
    f32 = jnp.float32
    out_dtype = x.dtype

    # Row tiling along L, per batch element (conv halos never cross sequences).
    block_rows = max(8, min(block_rows, ((L + 7) // 8) * 8))
    assert block_rows % 8 == 0
    n_tiles = pl.cdiv(L, block_rows)
    L_pad = n_tiles * block_rows                          # zero-row padded length

    # xpad_full[:, j] = x[:, j - padding] (zeros outside [0, L)); enough back
    # rows that every tile's tail halo is in range and zero past sequence end.
    total_rows = L_pad + HALO
    xc = x.astype(cdt)
    xpad_full = jnp.pad(xc, ((0, 0), (padding, total_rows - padding - L), (0, 0)))
    xpad = xpad_full[:, :L_pad]                                    # (B, L_pad, D)
    tail_idx = (jnp.arange(1, n_tiles + 1)[:, None] * block_rows
                + jnp.arange(HALO)[None, :])                       # (n_tiles, HALO)
    tails = xpad_full[:, tail_idx, :]                              # (B, n_tiles, HALO, D)

    # ---- host-side weight prep (weights stay resident in VMEM) --------------
    Hc = params["cnnfc_w"].shape[-1]
    c1_w = params["c1_w"]
    weights = [
        params["conv_w"].astype(cdt),                 # (K, D, C) — indexed per tap
        params["conv_b"].astype(f32),
        params["cnnfc_w"].astype(cdt), params["cnnfc_b"].astype(f32),
        params["f1_w"].astype(cdt), params["f1_b"].astype(f32),
        params["f2_w"].astype(cdt), params["f2_b"].astype(f32),
        c1_w[:Hc].astype(cdt),                        # concat -> split weight
        c1_w[Hc:].astype(cdt),
        params["c1_b"].astype(f32),
        jnp.pad(params["c2_w"], ((0, 0), (0, n_pad - output_dim))).astype(cdt),
        jnp.pad(params["c2_b"], ((0, 0), (0, n_pad - output_dim))).astype(f32),
    ]

    def resident(w):   # full block, same block index every step -> DMA'd once
        nd = w.ndim
        return pl.BlockSpec(w.shape, lambda *_, nd=nd: (0,) * nd)

    in_specs = [
        pl.BlockSpec((1, block_rows, D), lambda b, t: (b, t, 0)),
        pl.BlockSpec((1, 1, HALO, D), lambda b, t: (b, t, 0, 0)),
    ] + [resident(w) for w in weights]
    out_specs = pl.BlockSpec((1, block_rows, n_pad), lambda b, t: (b, t, 0))

    # Advisory cost estimate so XLA schedules the tiny host-side glue well.
    C = params["conv_b"].shape[-1]
    H1 = params["f1_w"].shape[-1]
    H2 = params["f2_w"].shape[-1]
    S = params["c1_w"].shape[-1]
    Mr = B * L_pad
    flops = 2 * Mr * (K * D * C + C * Hc + D * H1 + H1 * H2
                      + (Hc + H2) * S + S * n_pad)
    bytes_accessed = (xpad.size * xpad.dtype.itemsize
                      + tails.size * tails.dtype.itemsize
                      + sum(w.size * w.dtype.itemsize for w in weights)
                      + Mr * n_pad * jnp.dtype(out_dtype).itemsize)

    out = pl.pallas_call(
        combined_cnn_kernel,
        out_shape=jax.ShapeDtypeStruct((B, L_pad, n_pad), out_dtype),
        grid=(B, n_tiles),
        in_specs=in_specs,
        out_specs=out_specs,
        compiler_params=pltpu.CompilerParams(
            dimension_semantics=("parallel", "parallel")),
        cost_estimate=pl.CostEstimate(flops=flops, transcendentals=0,
                                      bytes_accessed=bytes_accessed),
    )(xpad, tails, *weights)

    # Drop padded rows / padded output lanes.
    return out[:, :L, :output_dim]


def reference_forward(x, params, *, kernel_size, padding):
    """Pure-JAX reference with the module's semantics (correctness check)."""
    B, L, D = x.shape
    K = kernel_size
    xpad = jnp.pad(x, ((0, 0), (padding, padding), (0, 0)))
    C = params["conv_b"].shape[-1]
    conv = jnp.zeros((B, L, C), x.dtype)
    for k in range(K):
        conv = conv + jnp.einsum("bld,dc->blc", xpad[:, k:k + L, :],
                                 params["conv_w"][k])
    conv = _leaky(conv + params["conv_b"])
    cnn_out = _leaky(conv @ params["cnnfc_w"] + params["cnnfc_b"])
    h1 = _leaky(x @ params["f1_w"] + params["f1_b"])
    h2 = _leaky(h1 @ params["f2_w"] + params["f2_b"])
    cat = jnp.concatenate([cnn_out, h2], axis=-1)
    g1 = _leaky(cat @ params["c1_w"] + params["c1_b"])
    return g1 @ params["c2_w"] + params["c2_b"]


def init_params(key, *, input_dim, n_channels, kernel_size,
                cnn_hidden, fnn_hidden, shared_hidden, output_dim):
    ks = jax.random.split(key, 12)
    dt = jnp.float32

    def w(k, shape, fan_in):
        return jax.random.normal(k, shape, dt) / jnp.sqrt(jnp.asarray(fan_in, dt))

    def b(k, n):
        return 0.1 * jax.random.normal(k, (1, n), dt)

    return {
        # torch Conv1d weight is (C_out, C_in, K); stored here as (K, C_in, C_out).
        "conv_w": w(ks[0], (kernel_size, input_dim, n_channels),
                    input_dim * kernel_size),
        "conv_b": b(ks[1], n_channels),
        "cnnfc_w": w(ks[2], (n_channels, cnn_hidden[-1]), n_channels),
        "cnnfc_b": b(ks[3], cnn_hidden[-1]),
        "f1_w": w(ks[4], (input_dim, fnn_hidden[0]), input_dim),
        "f1_b": b(ks[5], fnn_hidden[0]),
        "f2_w": w(ks[6], (fnn_hidden[0], fnn_hidden[1]), fnn_hidden[0]),
        "f2_b": b(ks[7], fnn_hidden[1]),
        "c1_w": w(ks[8], (cnn_hidden[-1] + fnn_hidden[-1], shared_hidden[0]),
                  cnn_hidden[-1] + fnn_hidden[-1]),
        "c1_b": b(ks[9], shared_hidden[0]),
        "c2_w": w(ks[10], (shared_hidden[0], output_dim), shared_hidden[0]),
        "c2_b": b(ks[11], output_dim),
    }


if __name__ == "__main__":
    # Small config consistent with CombinedCNN's structure (defaults scaled
    # down).  L=192 with block_rows=128 exercises the row-padding path and
    # yields a (B=4, n_tiles=2) = 8-step grid, both axes parallel.
    B, L = 4, 192
    input_dim, n_channels, output_dim = 64, 32, 8
    kernel_size, padding = 7, 3
    cnn_hidden = [16]
    fnn_hidden = [32, 16]
    shared_hidden = [16]

    key = jax.random.PRNGKey(0)
    kx, kp = jax.random.split(key)
    x = jax.random.normal(kx, (B, L, input_dim), jnp.float32)
    params = init_params(kp, input_dim=input_dim, n_channels=n_channels,
                         kernel_size=kernel_size, cnn_hidden=cnn_hidden,
                         fnn_hidden=fnn_hidden, shared_hidden=shared_hidden,
                         output_dim=output_dim)

    ref = reference_forward(x, params, kernel_size=kernel_size, padding=padding)

    # f32 MXU operands (exact-ish path).
    out_f32 = jax.block_until_ready(
        combined_cnn_forward(x, params, kernel_size=kernel_size,
                             padding=padding, output_dim=output_dim,
                             block_rows=128, compute_dtype=jnp.float32))
    assert out_f32.shape == (B, L, output_dim)
    assert jnp.allclose(out_f32, ref, rtol=1e-3, atol=1e-3), "f32 mismatch"

    # bf16 MXU operands, f32 accumulation/elementwise (default on all gens).
    out_bf16 = jax.block_until_ready(
        combined_cnn_forward(x, params, kernel_size=kernel_size,
                             padding=padding, output_dim=output_dim,
                             block_rows=128, compute_dtype=jnp.bfloat16))
    assert out_bf16.shape == (B, L, output_dim)
    assert jnp.allclose(out_bf16, ref, rtol=5e-2, atol=5e-2), "bf16 mismatch"

    # TODO(synk): Dropout (cnn/fnn/shared_dropout_rate) is None by default and
    # inference-time identity, so it is intentionally not implemented.
    print("KERNEL_OK")
</pallas_src>

<mosaic_0001>
module attributes {stable_mosaic.version = 11 : i64} {
  func.func @combined_cnn_kernel(%arg0: i32, %arg1: i32, %arg2: memref<1x128x64xf32, #tpu.memory_space<vmem>>, %arg3: memref<1x1x8x64xf32, #tpu.memory_space<vmem>>, %arg4: memref<7x64x32xf32, #tpu.memory_space<vmem>>, %arg5: memref<1x32xf32, #tpu.memory_space<vmem>>, %arg6: memref<32x16xf32, #tpu.memory_space<vmem>>, %arg7: memref<1x16xf32, #tpu.memory_space<vmem>>, %arg8: memref<64x32xf32, #tpu.memory_space<vmem>>, %arg9: memref<1x32xf32, #tpu.memory_space<vmem>>, %arg10: memref<32x16xf32, #tpu.memory_space<vmem>>, %arg11: memref<1x16xf32, #tpu.memory_space<vmem>>, %arg12: memref<16x16xf32, #tpu.memory_space<vmem>>, %arg13: memref<16x16xf32, #tpu.memory_space<vmem>>, %arg14: memref<1x16xf32, #tpu.memory_space<vmem>>, %arg15: memref<16x128xf32, #tpu.memory_space<vmem>>, %arg16: memref<1x128xf32, #tpu.memory_space<vmem>>, %arg17: memref<1x128x128xf32, #tpu.memory_space<vmem>>) attributes {dimension_semantics = [#tpu.dimension_semantics<parallel>, #tpu.dimension_semantics<parallel>], iteration_bounds = array<i64: 4, 2>, scalar_prefetch = 0 : i64, scratch_operands = 0 : i64, tpu.core_type = #tpu.core_type<tc>, window_params = [{transform_indices = @transform_0, window_bounds = array<i64: 1, 128, 64>}, {transform_indices = @transform_1, window_bounds = array<i64: 1, 1, 8, 64>}, {pipeline_mode = #tpu.pipeline_mode<synchronous>, transform_indices = @transform_2, window_bounds = array<i64: 7, 64, 32>}, {pipeline_mode = #tpu.pipeline_mode<synchronous>, transform_indices = @transform_3, window_bounds = array<i64: 1, 32>}, {pipeline_mode = #tpu.pipeline_mode<synchronous>, transform_indices = @transform_4, window_bounds = array<i64: 32, 16>}, {pipeline_mode = #tpu.pipeline_mode<synchronous>, transform_indices = @transform_5, window_bounds = array<i64: 1, 16>}, {pipeline_mode = #tpu.pipeline_mode<synchronous>, transform_indices = @transform_6, window_bounds = array<i64: 64, 32>}, {pipeline_mode = #tpu.pipeline_mode<synchronous>, transform_indices = @transform_7, window_bounds = array<i64: 1, 32>}, {pipeline_mode = #tpu.pipeline_mode<synchronous>, transform_indices = @transform_8, window_bounds = array<i64: 32, 16>}, {pipeline_mode = #tpu.pipeline_mode<synchronous>, transform_indices = @transform_9, window_bounds = array<i64: 1, 16>}, {pipeline_mode = #tpu.pipeline_mode<synchronous>, transform_indices = @transform_10, window_bounds = array<i64: 16, 16>}, {pipeline_mode = #tpu.pipeline_mode<synchronous>, transform_indices = @transform_11, window_bounds = array<i64: 16, 16>}, {pipeline_mode = #tpu.pipeline_mode<synchronous>, transform_indices = @transform_12, window_bounds = array<i64: 1, 16>}, {pipeline_mode = #tpu.pipeline_mode<synchronous>, transform_indices = @transform_13, window_bounds = array<i64: 16, 128>}, {pipeline_mode = #tpu.pipeline_mode<synchronous>, transform_indices = @transform_14, window_bounds = array<i64: 1, 128>}, {transform_indices = @transform_15, window_bounds = array<i64: 1, 128, 128>}]} {
    %c0 = arith.constant 0 : index
    %c0_0 = arith.constant 0 : index
    %c0_1 = arith.constant 0 : index
    %0 = vector.load %arg2[%c0, %c0_0, %c0_1] : memref<1x128x64xf32, #tpu.memory_space<vmem>>, vector<1x128x64xf32>
    %1 = vector.shape_cast %0 : vector<1x128x64xf32> to vector<128x64xf32>
    %c0_2 = arith.constant 0 : index
    %c0_3 = arith.constant 0 : index
    %c0_4 = arith.constant 0 : index
    %c0_5 = arith.constant 0 : index
    %2 = vector.load %arg3[%c0_2, %c0_3, %c0_4, %c0_5] : memref<1x1x8x64xf32, #tpu.memory_space<vmem>>, vector<1x1x8x64xf32>
    %3 = vector.shape_cast %2 : vector<1x1x8x64xf32> to vector<8x64xf32>
    %4 = tpu.concatenate %1, %3 in 0 : vector<128x64xf32>, vector<8x64xf32> -> vector<136x64xf32>
    %5 = vector.extract_strided_slice %4 {offsets = [0, 0], sizes = [128, 64], strides = [1, 1]} : vector<136x64xf32> to vector<128x64xf32>
    %6 = vector.extract_strided_slice %4 {offsets = [1, 0], sizes = [128, 64], strides = [1, 1]} : vector<136x64xf32> to vector<128x64xf32>
    %7 = vector.extract_strided_slice %4 {offsets = [2, 0], sizes = [128, 64], strides = [1, 1]} : vector<136x64xf32> to vector<128x64xf32>
    %8 = vector.extract_strided_slice %4 {offsets = [3, 0], sizes = [128, 64], strides = [1, 1]} : vector<136x64xf32> to vector<128x64xf32>
    %9 = vector.extract_strided_slice %4 {offsets = [4, 0], sizes = [128, 64], strides = [1, 1]} : vector<136x64xf32> to vector<128x64xf32>
    %10 = vector.extract_strided_slice %4 {offsets = [5, 0], sizes = [128, 64], strides = [1, 1]} : vector<136x64xf32> to vector<128x64xf32>
    %11 = vector.extract_strided_slice %4 {offsets = [6, 0], sizes = [128, 64], strides = [1, 1]} : vector<136x64xf32> to vector<128x64xf32>
    %cst = arith.constant 0.000000e+00 : f32
    %12 = vector.broadcast %cst : f32 to vector<128x32xf32>
    %c0_6 = arith.constant 0 : index
    %c0_7 = arith.constant 0 : index
    %c0_8 = arith.constant 0 : index
    %13 = vector.load %arg4[%c0_6, %c0_7, %c0_8] : memref<7x64x32xf32, #tpu.memory_space<vmem>>, vector<1x64x32xf32>
    %14 = vector.shape_cast %13 : vector<1x64x32xf32> to vector<64x32xf32>
    %cst_9 = arith.constant dense<0.000000e+00> : vector<128x32xf32>
    %15 = tpu.matmul %5, %14, %cst_9 {dimension_numbers = #tpu.dot_dimension_numbers<[1], [0], [0], [1], [0, 0, 1, 1], [], []>} : vector<128x64xf32>, vector<64x32xf32>, vector<128x32xf32> -> vector<128x32xf32>
    %16 = arith.addf %12, %15 : vector<128x32xf32>
    %c1 = arith.constant 1 : index
    %c0_10 = arith.constant 0 : index
    %c0_11 = arith.constant 0 : index
    %17 = vector.load %arg4[%c1, %c0_10, %c0_11] : memref<7x64x32xf32, #tpu.memory_space<vmem>>, vector<1x64x32xf32>
    %18 = vector.shape_cast %17 : vector<1x64x32xf32> to vector<64x32xf32>
    %cst_12 = arith.constant dense<0.000000e+00> : vector<128x32xf32>
    %19 = tpu.matmul %6, %18, %cst_12 {dimension_numbers = #tpu.dot_dimension_numbers<[1], [0], [0], [1], [0, 0, 1, 1], [], []>} : vector<128x64xf32>, vector<64x32xf32>, vector<128x32xf32> -> vector<128x32xf32>
    %20 = arith.addf %16, %19 : vector<128x32xf32>
    %c2 = arith.constant 2 : index
    %c0_13 = arith.constant 0 : index
    %c0_14 = arith.constant 0 : index
    %21 = vector.load %arg4[%c2, %c0_13, %c0_14] : memref<7x64x32xf32, #tpu.memory_space<vmem>>, vector<1x64x32xf32>
    %22 = vector.shape_cast %21 : vector<1x64x32xf32> to vector<64x32xf32>
    %cst_15 = arith.constant dense<0.000000e+00> : vector<128x32xf32>
    %23 = tpu.matmul %7, %22, %cst_15 {dimension_numbers = #tpu.dot_dimension_numbers<[1], [0], [0], [1], [0, 0, 1, 1], [], []>} : vector<128x64xf32>, vector<64x32xf32>, vector<128x32xf32> -> vector<128x32xf32>
    %24 = arith.addf %20, %23 : vector<128x32xf32>
    %c3 = arith.constant 3 : index
    %c0_16 = arith.constant 0 : index
    %c0_17 = arith.constant 0 : index
    %25 = vector.load %arg4[%c3, %c0_16, %c0_17] : memref<7x64x32xf32, #tpu.memory_space<vmem>>, vector<1x64x32xf32>
    %26 = vector.shape_cast %25 : vector<1x64x32xf32> to vector<64x32xf32>
    %cst_18 = arith.constant dense<0.000000e+00> : vector<128x32xf32>
    %27 = tpu.matmul %8, %26, %cst_18 {dimension_numbers = #tpu.dot_dimension_numbers<[1], [0], [0], [1], [0, 0, 1, 1], [], []>} : vector<128x64xf32>, vector<64x32xf32>, vector<128x32xf32> -> vector<128x32xf32>
    %28 = arith.addf %24, %27 : vector<128x32xf32>
    %c4 = arith.constant 4 : index
    %c0_19 = arith.constant 0 : index
    %c0_20 = arith.constant 0 : index
    %29 = vector.load %arg4[%c4, %c0_19, %c0_20] : memref<7x64x32xf32, #tpu.memory_space<vmem>>, vector<1x64x32xf32>
    %30 = vector.shape_cast %29 : vector<1x64x32xf32> to vector<64x32xf32>
    %cst_21 = arith.constant dense<0.000000e+00> : vector<128x32xf32>
    %31 = tpu.matmul %9, %30, %cst_21 {dimension_numbers = #tpu.dot_dimension_numbers<[1], [0], [0], [1], [0, 0, 1, 1], [], []>} : vector<128x64xf32>, vector<64x32xf32>, vector<128x32xf32> -> vector<128x32xf32>
    %32 = arith.addf %28, %31 : vector<128x32xf32>
    %c5 = arith.constant 5 : index
    %c0_22 = arith.constant 0 : index
    %c0_23 = arith.constant 0 : index
    %33 = vector.load %arg4[%c5, %c0_22, %c0_23] : memref<7x64x32xf32, #tpu.memory_space<vmem>>, vector<1x64x32xf32>
    %34 = vector.shape_cast %33 : vector<1x64x32xf32> to vector<64x32xf32>
    %cst_24 = arith.constant dense<0.000000e+00> : vector<128x32xf32>
    %35 = tpu.matmul %10, %34, %cst_24 {dimension_numbers = #tpu.dot_dimension_numbers<[1], [0], [0], [1], [0, 0, 1, 1], [], []>} : vector<128x64xf32>, vector<64x32xf32>, vector<128x32xf32> -> vector<128x32xf32>
    %36 = arith.addf %32, %35 : vector<128x32xf32>
    %c6 = arith.constant 6 : index
    %c0_25 = arith.constant 0 : index
    %c0_26 = arith.constant 0 : index
    %37 = vector.load %arg4[%c6, %c0_25, %c0_26] : memref<7x64x32xf32, #tpu.memory_space<vmem>>, vector<1x64x32xf32>
    %38 = vector.shape_cast %37 : vector<1x64x32xf32> to vector<64x32xf32>
    %cst_27 = arith.constant dense<0.000000e+00> : vector<128x32xf32>
    %39 = tpu.matmul %11, %38, %cst_27 {dimension_numbers = #tpu.dot_dimension_numbers<[1], [0], [0], [1], [0, 0, 1, 1], [], []>} : vector<128x64xf32>, vector<64x32xf32>, vector<128x32xf32> -> vector<128x32xf32>
    %40 = arith.addf %36, %39 : vector<128x32xf32>
    %c0_28 = arith.constant 0 : index
    %c0_29 = arith.constant 0 : index
    %41 = vector.load %arg5[%c0_28, %c0_29] : memref<1x32xf32, #tpu.memory_space<vmem>>, vector<1x32xf32>
    %42 = vector.broadcast %41 : vector<1x32xf32> to vector<128x32xf32>
    %43 = arith.addf %40, %42 : vector<128x32xf32>
    %cst_30 = arith.constant 0.000000e+00 : f32
    %44 = vector.broadcast %cst_30 : f32 to vector<128x32xf32>
    %45 = arith.cmpf ogt, %43, %44 : vector<128x32xf32>
    %cst_31 = arith.constant 0.00999999977 : f32
    %46 = vector.broadcast %cst_31 : f32 to vector<128x32xf32>
    %47 = arith.mulf %46, %43 : vector<128x32xf32>
    %48 = arith.select %45, %43, %47 : vector<128x32xi1>, vector<128x32xf32>
    %c0_32 = arith.constant 0 : index
    %c0_33 = arith.constant 0 : index
    %49 = vector.load %arg6[%c0_32, %c0_33] : memref<32x16xf32, #tpu.memory_space<vmem>>, vector<32x16xf32>
    %cst_34 = arith.constant dense<0.000000e+00> : vector<128x16xf32>
    %50 = tpu.matmul %48, %49, %cst_34 {dimension_numbers = #tpu.dot_dimension_numbers<[1], [0], [0], [1], [0, 0, 1, 1], [], []>} : vector<128x32xf32>, vector<32x16xf32>, vector<128x16xf32> -> vector<128x16xf32>
    %c0_35 = arith.constant 0 : index
    %c0_36 = arith.constant 0 : index
    %51 = vector.load %arg7[%c0_35, %c0_36] : memref<1x16xf32, #tpu.memory_space<vmem>>, vector<1x16xf32>
    %52 = vector.broadcast %51 : vector<1x16xf32> to vector<128x16xf32>
    %53 = arith.addf %50, %52 : vector<128x16xf32>
    %cst_37 = arith.constant 0.000000e+00 : f32
    %54 = vector.broadcast %cst_37 : f32 to vector<128x16xf32>
    %55 = arith.cmpf ogt, %53, %54 : vector<128x16xf32>
    %cst_38 = arith.constant 0.00999999977 : f32
    %56 = vector.broadcast %cst_38 : f32 to vector<128x16xf32>
    %57 = arith.mulf %56, %53 : vector<128x16xf32>
    %58 = arith.select %55, %53, %57 : vector<128x16xi1>, vector<128x16xf32>
    %c0_39 = arith.constant 0 : index
    %c0_40 = arith.constant 0 : index
    %59 = vector.load %arg8[%c0_39, %c0_40] : memref<64x32xf32, #tpu.memory_space<vmem>>, vector<64x32xf32>
    %cst_41 = arith.constant dense<0.000000e+00> : vector<128x32xf32>
    %60 = tpu.matmul %8, %59, %cst_41 {dimension_numbers = #tpu.dot_dimension_numbers<[1], [0], [0], [1], [0, 0, 1, 1], [], []>} : vector<128x64xf32>, vector<64x32xf32>, vector<128x32xf32> -> vector<128x32xf32>
    %c0_42 = arith.constant 0 : index
    %c0_43 = arith.constant 0 : index
    %61 = vector.load %arg9[%c0_42, %c0_43] : memref<1x32xf32, #tpu.memory_space<vmem>>, vector<1x32xf32>
    %62 = vector.broadcast %61 : vector<1x32xf32> to vector<128x32xf32>
    %63 = arith.addf %60, %62 : vector<128x32xf32>
    %cst_44 = arith.constant 0.000000e+00 : f32
    %64 = vector.broadcast %cst_44 : f32 to vector<128x32xf32>
    %65 = arith.cmpf ogt, %63, %64 : vector<128x32xf32>
    %cst_45 = arith.constant 0.00999999977 : f32
    %66 = vector.broadcast %cst_45 : f32 to vector<128x32xf32>
    %67 = arith.mulf %66, %63 : vector<128x32xf32>
    %68 = arith.select %65, %63, %67 : vector<128x32xi1>, vector<128x32xf32>
    %c0_46 = arith.constant 0 : index
    %c0_47 = arith.constant 0 : index
    %69 = vector.load %arg10[%c0_46, %c0_47] : memref<32x16xf32, #tpu.memory_space<vmem>>, vector<32x16xf32>
    %cst_48 = arith.constant dense<0.000000e+00> : vector<128x16xf32>
    %70 = tpu.matmul %68, %69, %cst_48 {dimension_numbers = #tpu.dot_dimension_numbers<[1], [0], [0], [1], [0, 0, 1, 1], [], []>} : vector<128x32xf32>, vector<32x16xf32>, vector<128x16xf32> -> vector<128x16xf32>
    %c0_49 = arith.constant 0 : index
    %c0_50 = arith.constant 0 : index
    %71 = vector.load %arg11[%c0_49, %c0_50] : memref<1x16xf32, #tpu.memory_space<vmem>>, vector<1x16xf32>
    %72 = vector.broadcast %71 : vector<1x16xf32> to vector<128x16xf32>
    %73 = arith.addf %70, %72 : vector<128x16xf32>
    %cst_51 = arith.constant 0.000000e+00 : f32
    %74 = vector.broadcast %cst_51 : f32 to vector<128x16xf32>
    %75 = arith.cmpf ogt, %73, %74 : vector<128x16xf32>
    %cst_52 = arith.constant 0.00999999977 : f32
    %76 = vector.broadcast %cst_52 : f32 to vector<128x16xf32>
    %77 = arith.mulf %76, %73 : vector<128x16xf32>
    %78 = arith.select %75, %73, %77 : vector<128x16xi1>, vector<128x16xf32>
    %c0_53 = arith.constant 0 : index
    %c0_54 = arith.constant 0 : index
    %79 = vector.load %arg12[%c0_53, %c0_54] : memref<16x16xf32, #tpu.memory_space<vmem>>, vector<16x16xf32>
    %cst_55 = arith.constant dense<0.000000e+00> : vector<128x16xf32>
    %80 = tpu.matmul %58, %79, %cst_55 {dimension_numbers = #tpu.dot_dimension_numbers<[1], [0], [0], [1], [0, 0, 1, 1], [], []>} : vector<128x16xf32>, vector<16x16xf32>, vector<128x16xf32> -> vector<128x16xf32>
    %c0_56 = arith.constant 0 : index
    %c0_57 = arith.constant 0 : index
    %81 = vector.load %arg13[%c0_56, %c0_57] : memref<16x16xf32, #tpu.memory_space<vmem>>, vector<16x16xf32>
    %cst_58 = arith.constant dense<0.000000e+00> : vector<128x16xf32>
    %82 = tpu.matmul %78, %81, %cst_58 {dimension_numbers = #tpu.dot_dimension_numbers<[1], [0], [0], [1], [0, 0, 1, 1], [], []>} : vector<128x16xf32>, vector<16x16xf32>, vector<128x16xf32> -> vector<128x16xf32>
    %83 = arith.addf %80, %82 : vector<128x16xf32>
    %c0_59 = arith.constant 0 : index
    %c0_60 = arith.constant 0 : index
    %84 = vector.load %arg14[%c0_59, %c0_60] : memref<1x16xf32, #tpu.memory_space<vmem>>, vector<1x16xf32>
    %85 = vector.broadcast %84 : vector<1x16xf32> to vector<128x16xf32>
    %86 = arith.addf %83, %85 : vector<128x16xf32>
    %cst_61 = arith.constant 0.000000e+00 : f32
    %87 = vector.broadcast %cst_61 : f32 to vector<128x16xf32>
    %88 = arith.cmpf ogt, %86, %87 : vector<128x16xf32>
    %cst_62 = arith.constant 0.00999999977 : f32
    %89 = vector.broadcast %cst_62 : f32 to vector<128x16xf32>
    %90 = arith.mulf %89, %86 : vector<128x16xf32>
    %91 = arith.select %88, %86, %90 : vector<128x16xi1>, vector<128x16xf32>
    %c0_63 = arith.constant 0 : index
    %c0_64 = arith.constant 0 : index
    %92 = vector.load %arg15[%c0_63, %c0_64] : memref<16x128xf32, #tpu.memory_space<vmem>>, vector<16x128xf32>
    %cst_65 = arith.constant dense<0.000000e+00> : vector<128x128xf32>
    %93 = tpu.matmul %91, %92, %cst_65 {dimension_numbers = #tpu.dot_dimension_numbers<[1], [0], [0], [1], [0, 0, 1, 1], [], []>} : vector<128x16xf32>, vector<16x128xf32>, vector<128x128xf32> -> vector<128x128xf32>
    %c0_66 = arith.constant 0 : index
    %c0_67 = arith.constant 0 : index
    %94 = vector.load %arg16[%c0_66, %c0_67] : memref<1x128xf32, #tpu.memory_space<vmem>>, vector<1x128xf32>
    %95 = vector.broadcast %94 : vector<1x128xf32> to vector<128x128xf32>
    %96 = arith.addf %93, %95 : vector<128x128xf32>
    %c0_68 = arith.constant 0 : index
    %c0_69 = arith.constant 0 : index
    %c0_70 = arith.constant 0 : index
    %97 = vector.load %arg17[%c0_68, %c0_69, %c0_70] : memref<1x128x128xf32, #tpu.memory_space<vmem>>, vector<1x128x128xf32>
    %98 = vector.shape_cast %97 : vector<1x128x128xf32> to vector<128x128xf32>
    %99 = vector.shape_cast %96 : vector<128x128xf32> to vector<1x128x128xf32>
    tpu.vector_store %arg17[%c0_68, %c0_69, %c0_70], %99 {strides = array<i32>} : memref<1x128x128xf32, #tpu.memory_space<vmem>>, vector<1x128x128xf32>,
    return
  }
  func.func @transform_0(%arg0: i32, %arg1: i32) -> (i32, i32, i32) {
    %c0_i32 = arith.constant 0 : i32
    %c0_i32_0 = arith.constant 0 : i32
    return %arg0, %arg1, %c0_i32 : i32, i32, i32
  }
  func.func @transform_1(%arg0: i32, %arg1: i32) -> (i32, i32, i32, i32) {
    %c0_i32 = arith.constant 0 : i32
    %c0_i32_0 = arith.constant 0 : i32
    %c0_i32_1 = arith.constant 0 : i32
    return %arg0, %arg1, %c0_i32, %c0_i32_0 : i32, i32, i32, i32
  }
  func.func @transform_2(%arg0: i32, %arg1: i32) -> (i32, i32, i32) {
    %c0_i32 = arith.constant 0 : i32
    %c0_i32_0 = arith.constant 0 : i32
    %c0_i32_1 = arith.constant 0 : i32
    %c0_i32_2 = arith.constant 0 : i32
    return %c0_i32, %c0_i32_0, %c0_i32_1 : i32, i32, i32
  }
  func.func @transform_3(%arg0: i32, %arg1: i32) -> (i32, i32) {
    %c0_i32 = arith.constant 0 : i32
    %c0_i32_0 = arith.constant 0 : i32
    %c0_i32_1 = arith.constant 0 : i32
    return %c0_i32, %c0_i32_0 : i32, i32
  }
  func.func @transform_4(%arg0: i32, %arg1: i32) -> (i32, i32) {
    %c0_i32 = arith.constant 0 : i32
    %c0_i32_0 = arith.constant 0 : i32
    %c0_i32_1 = arith.constant 0 : i32
    return %c0_i32, %c0_i32_0 : i32, i32
  }
  func.func @transform_5(%arg0: i32, %arg1: i32) -> (i32, i32) {
    %c0_i32 = arith.constant 0 : i32
    %c0_i32_0 = arith.constant 0 : i32
    %c0_i32_1 = arith.constant 0 : i32
    return %c0_i32, %c0_i32_0 : i32, i32
  }
  func.func @transform_6(%arg0: i32, %arg1: i32) -> (i32, i32) {
    %c0_i32 = arith.constant 0 : i32
    %c0_i32_0 = arith.constant 0 : i32
    %c0_i32_1 = arith.constant 0 : i32
    return %c0_i32, %c0_i32_0 : i32, i32
  }
  func.func @transform_7(%arg0: i32, %arg1: i32) -> (i32, i32) {
    %c0_i32 = arith.constant 0 : i32
    %c0_i32_0 = arith.constant 0 : i32
    %c0_i32_1 = arith.constant 0 : i32
    return %c0_i32, %c0_i32_0 : i32, i32
  }
  func.func @transform_8(%arg0: i32, %arg1: i32) -> (i32, i32) {
    %c0_i32 = arith.constant 0 : i32
    %c0_i32_0 = arith.constant 0 : i32
    %c0_i32_1 = arith.constant 0 : i32
    return %c0_i32, %c0_i32_0 : i32, i32
  }
  func.func @transform_9(%arg0: i32, %arg1: i32) -> (i32, i32) {
    %c0_i32 = arith.constant 0 : i32
    %c0_i32_0 = arith.constant 0 : i32
    %c0_i32_1 = arith.constant 0 : i32
    return %c0_i32, %c0_i32_0 : i32, i32
  }
  func.func @transform_10(%arg0: i32, %arg1: i32) -> (i32, i32) {
    %c0_i32 = arith.constant 0 : i32
    %c0_i32_0 = arith.constant 0 : i32
    %c0_i32_1 = arith.constant 0 : i32
    return %c0_i32, %c0_i32_0 : i32, i32
  }
  func.func @transform_11(%arg0: i32, %arg1: i32) -> (i32, i32) {
    %c0_i32 = arith.constant 0 : i32
    %c0_i32_0 = arith.constant 0 : i32
    %c0_i32_1 = arith.constant 0 : i32
    return %c0_i32, %c0_i32_0 : i32, i32
  }
  func.func @transform_12(%arg0: i32, %arg1: i32) -> (i32, i32) {
    %c0_i32 = arith.constant 0 : i32
    %c0_i32_0 = arith.constant 0 : i32
    %c0_i32_1 = arith.constant 0 : i32
    return %c0_i32, %c0_i32_0 : i32, i32
  }
  func.func @transform_13(%arg0: i32, %arg1: i32) -> (i32, i32) {
    %c0_i32 = arith.constant 0 : i32
    %c0_i32_0 = arith.constant 0 : i32
    %c0_i32_1 = arith.constant 0 : i32
    return %c0_i32, %c0_i32_0 : i32, i32
  }
  func.func @transform_14(%arg0: i32, %arg1: i32) -> (i32, i32) {
    %c0_i32 = arith.constant 0 : i32
    %c0_i32_0 = arith.constant 0 : i32
    %c0_i32_1 = arith.constant 0 : i32
    return %c0_i32, %c0_i32_0 : i32, i32
  }
  func.func @transform_15(%arg0: i32, %arg1: i32) -> (i32, i32, i32) {
    %c0_i32 = arith.constant 0 : i32
    %c0_i32_0 = arith.constant 0 : i32
    return %arg0, %arg1, %c0_i32 : i32, i32, i32
  }
}

</mosaic_0001>

<bundles_post_ra>
// kernel: tpu_custom_call.1
= control target key start
LH: loop header
LB: loop body
LE: loop exit
PB: predicated region body
PF: predicated region fallthrough
CT: control target
= control target key end

     0   :  { %s6572_s0 = inlined_call_operand.vmem [shape: f32[4,256,64], index: 0, kind: input, shape index: {}]   ;;  %s6573_s1 = inlined_call_operand.vmem [shape: f32[4,2,8,64], index: 1, kind: input, shape index: {}]   ;;  %s6574_s2 = inlined_call_operand.vmem [shape: f32[7,64,32], index: 2, kind: input, shape index: {}]   ;;  %s6575_s3 = inlined_call_operand.vmem [shape: f32[1,32], index: 3, kind: input, shape index: {}]   ;;  %s6576_s4 = inlined_call_operand.vmem [shape: f32[32,16], index: 4, kind: input, shape index: {}]   ;;  %s6577_s5 = inlined_call_operand.vmem [shape: f32[1,16], index: 5, kind: input, shape index: {}]   ;;  %s6578_s6 = inlined_call_operand.vmem [shape: f32[64,32], index: 6, kind: input, shape index: {}]   ;;  %s6579_s7 = inlined_call_operand.vmem [shape: f32[1,32], index: 7, kind: input, shape index: {}]   ;;  %s6580_s8 = inlined_call_operand.vmem [shape: f32[32,16], index: 8, kind: input, shape index: {}]   ;;  %s6581_s9 = inlined_call_operand.vmem [shape: f32[1,16], index: 9, kind: input, shape index: {}]   ;;  %s6582_s10 = inlined_call_operand.vmem [shape: f32[16,16], index: 10, kind: input, shape index: {}]   ;;  %s6583_s11 = inlined_call_operand.vmem [shape: f32[16,16], index: 11, kind: input, shape index: {}]   ;;  %s6584_s12 = inlined_call_operand.vmem [shape: f32[1,16], index: 12, kind: input, shape index: {}]   ;;  %s6585_s13 = inlined_call_operand.vmem [shape: f32[16,128], index: 13, kind: input, shape index: {}]   ;;  %s6586_s14 = inlined_call_operand.vmem [shape: f32[1,128], index: 14, kind: input, shape index: {}]   ;;  %s6587_s15 = inlined_call_operand.hbm [shape: f32[4,256,128], index: 15, kind: output, shape index: {}]  }
   0x1   :  { %6601 = sst [smem:[#allocation16_spill]] %s6586_s14 }
   0x2   :  { %6602 = sst [smem:[#allocation17_spill]] %s6587_s15 }
   0x3   :  { %20 = vsyncpa [#allocation3], 0 }
   0x4   :  { %22 = vsyncpa [#allocation3 + $0x1], 0  ;;  %s5316_s18 = smov 0   ;;  %s5318_s19 = smov 0  }
   0x5   :  { %s5320_s20 = smov 0   ;;  %s5322_s21 = smov 0  }
   0x6   :  { %s5324_s22 = smov 0   ;;  %s5326_s23 = smov 0  }
   0x7   :  { %s5328_s24 = smov 0   ;;  %s5330_s25 = smov 0  }
   0x8 LB: > { %6603 = sst [smem:[#allocation5_spill]] %s5203_s18  ;;  %s3755_s26 = sadd.s32 4294967295, %s5231_s25   ;;  %s5231_s25 = sphi %s5330_s25, %s28_s25   ;;  %s5227_s24 = sphi %s5328_s24, %s6632_s24   ;;  %s5223_s23 = sphi %s5326_s23, %s6631_s23   ;;  %s5219_s22 = sphi %s5324_s22, %s6630_s22   ;;  %s5215_s21 = sphi %s5322_s21, %s6629_s21   ;;  %s5211_s20 = sphi %s5320_s20, %s6628_s20   ;;  %s5207_s19 = sphi %s5318_s19, %s6634_s19   ;;  %s5203_s18 = sphi %s5316_s18, %s6633_s18  }
   0x9   : > { %6604 = sst [smem:[#allocation6_spill]] %s5211_s20  ;;  %s3756_s27 = sadd.s32 4294967294, %s5231_s25  }
   0xa   : > { %6605 = sst [smem:[#allocation7_spill]] %s5223_s23  ;;  %s37_s28 = sadd.s32 1, %s5223_s23 }
   0xb   : > { %6606 = sst [smem:[#allocation8_spill]] %s5227_s24  ;;  %p38_p0 = scmp.ge.s32.totalorder %s37_s28, 2 }
   0xc   : > { %s40_s29 = sadd.s32 1, %s5227_s24  ;;  %p388_p1 = scmp.ne.s32.totalorder %s5211_s20, %s5207_s19 }
   0xd   : > { %p389_p2 = scmp.eq.s32.totalorder %s3755_s26, 7  ;;  %s6636_s28 = smov (%p38_p0, %s37_s28), 0 }
   0xe   : > { %6607 = sst [smem:[#allocation9_spill]] %s6636_s28  ;;  %s6638_s29 = smov (!%p38_p0, %s40_s29), %s5227_s24 }
   0xf   : > { %s374_s30 = ssub.s32 %s5223_s23, %s6636_s28  ;;  %p5367_p3 = por %p389_p2, %p388_p1 }
  0x10   : > { %p42_p4 = scmp.ge.s32.totalorder %s6638_s29, 4  ;;  %p394_p5 = scmp.ne.s32.totalorder %s5207_s19, %s5203_s18 }
  0x11   : > { %s6608_s16 = scalar_select %p5367_p3, 1, 0 }
  0x12   : > { %p395_p6 = scmp.eq.s32.totalorder %s3756_s27, 7  ;;  %p3759_p7 = scmp.ge.s32.totalorder %s5231_s25, 1 }
  0x13   : > { %6609 = sst [smem:[#allocation10_spill]] %s6608_s16  ;;  %s6640_s29 = smov (%p42_p4, %s6638_s29), 0 }
  0x14   : > { %6610 = sst [smem:[#allocation11_spill]] %s6640_s29  ;;  %p5376_p8 = por %p395_p6, %p394_p5 }
  0x15   : > { %p476_p9 = scmp.lt.s32.totalorder %s5231_s25, 9  ;;  %s373_s26 = ssub.s32 %s5227_s24, %s6640_s29 }
  0x16   : > { %s6611_s17 = scalar_select %p5376_p8, 1, 0 }
  0x17   : > { %s378_s15 = sadd.s32 1, %s5211_s20  ;;  %s375_s14 = sor.u32 %s374_s30, %s373_s26 }
  0x18   : > { %6612 = sst [smem:[#allocation12_spill]] %s6611_s17  ;;  %p477_p10 = pnand %p3759_p7, %p476_p9 }
  0x19   : > { %p376_p11 = scmp.eq.s32.totalorder %s375_s14, 0 }
  0x1a   : > { %480 = sbr.rel (%p477_p10) target bundleno = 1428 (0x594), region = 80 }
  0x1b   : > { %s5385_s28 = scalar_select %p376_p11, %s5211_s20, %s378_s15  }
  0x1d   : > { %6613 = sst [smem:[#allocation13_spill]] %s5385_s28 }
  0x21   : > { %v3766_v0 = vld [vmem:[%s6574_s2 + $0x40] sm:$0xff]  ;;  %v3767_v1 = vld [vmem:[%s6574_s2 + $0x48] sm:$0xff]  ;;  %v3768_v2 = vld [vmem:[%s6574_s2 + $0x50] sm:$0xff]  ;;  %s5397_s30 = sshll.u32 %s5215_s21, 4  ;;  %p537_p12 = scmp.lt.s32.totalorder %s5219_s22, 3  ;;  %vm606_vm0 = vcmask 1046528  }
  0x22   : > { %v4788_v3 = vpack.c.bf16 %v3767_v1, %v3766_v0  ;;  %v3769_v4 = vld [vmem:[%s6574_s2 + $0x58] sm:$0xff]  ;;  %p539_p13 = scmp.lt.s32.totalorder %s5397_s30, 31  ;;  %v3770_v6 = vld [vmem:[%s6574_s2 + $0x60] sm:$0xff]  ;;  %v3771_v7 = vld [vmem:[%s6574_s2 + $0x68] sm:$0xff]  ;;  %vm640_vm1 = vcmask 523264   ;;  %vm1240_vm2 = vcmask 1044480  }
  0x23   : > { %v4792_v5 = vpack.c.bf16 %v3769_v4, %v3768_v2  ;;  %s5411_s29 = scalar_select %p537_p12, %s5219_s22, 3  ;;  %v4796_v8 = vpack.c.bf16 %v3771_v7, %v3770_v6  ;;  %v3772_v9 = vld [vmem:[%s6574_s2 + $0x70] sm:$0xff]  ;;  %v3773_v10 = vld [vmem:[%s6574_s2 + $0x78] sm:$0xff]  ;;  %v572_v17 = vld [vmem:[%s6574_s2] sm:$0xff]  ;;  %vm1476_vm3 = vcmask 1043456   ;;  %vm1712_vm4 = vcmask 1042432  }
  0x24   : > { %4789 = vmatprep.subr.bf16.mxu0 %v4788_v3  ;;  %s540_s17 = scalar_select %p539_p13, %s5397_s30, 31  ;;  %4944 = vmatprep.subr.bf16.mxu1 %v4788_v3  ;;  %v4800_v13 = vpack.c.bf16 %v3773_v10, %v3772_v9  ;;  %v573_v18 = vld [vmem:[%s6574_s2 + $0x8] sm:$0xff]  ;;  %v574_v25 = vld [vmem:[%s6574_s2 + $0x10] sm:$0xff]  ;;  %v575_v26 = vld [vmem:[%s6574_s2 + $0x18] sm:$0xff]  ;;  %vm1004_vm5 = vcmask 1045504   ;;  %vm1948_vm6 = vcmask 1041408  }
  0x25   : > { %4791 = vmatpush3.bf16.msra.mxu0 %v4788_v3  ;;  %s3762_s27 = sshll.u32 %s5411_s29, 5  ;;  %4948 = vmatpush3.bf16.msra.mxu1 %v4788_v3  ;;  %v4804_v22 = vpack.c.bf16 %v573_v18, %v572_v17  ;;  %v4808_v31 = vpack.c.bf16 %v575_v26, %v574_v25  ;;  %v576_v34 = vld [vmem:[%s6574_s2 + $0x20] sm:$0xff]  ;;  %v577_v35 = vld [vmem:[%s6574_s2 + $0x28] sm:$0xff]  ;;  %v578_v40 = vld [vmem:[%s6574_s2 + $0x30] sm:$0xff]  ;;  %p548_p0 = scmp.lt.s32.totalorder %s5215_s21, 1  ;;  %vm2257_vm9 = vcmask 261120  }
  0x26   : > { %4793 = vmatprep.subr.bf16.mxu0 %v4792_v5  ;;  %s542_s14 = sadd.s32 %s3762_s27, %s540_s17  ;;  %4945 = vmatprep.subr.bf16.mxu1 %v4792_v5  ;;  %v579_v41 = vld [vmem:[%s6574_s2 + $0x38] sm:$0xff]  ;;  %v4812_v43 = vpack.c.bf16 %v577_v35, %v576_v34  ;;  %v3806_v59 = vld [vmem:[%s6574_s2 + $0x80] sm:$0xff]  ;;  %v3807_v60 = vld [vmem:[%s6574_s2 + $0x88] sm:$0xff]  ;;  %s3764_s23 = sshll.u32 %s5411_s29, 1 }
  0x27   : > { %s3763_s26 = sshll.u32 %s542_s14, 3  ;;  %v4816_v48 = vpack.c.bf16 %v579_v41, %v578_v40  ;;  %v3808_v6 = vld [vmem:[%s6574_s2 + $0x90] sm:$0xff]  ;;  %v3809_v7 = vld [vmem:[%s6574_s2 + $0x98] sm:$0xff]  ;;  %v3810_v18 = vld [vmem:[%s6574_s2 + $0xa0] sm:$0xff]  ;;  %s6642_s21 = smov (!%p548_p0, %s5215_s21), 1 }
  0x28   : > { %s5424_s20 = scalar_lea.vmem %s6572_s0, %s3763_s26  ;;  %s551_s29 = sadd.s32 %s3764_s23, %s6642_s21 }
  0x29   : > { %4795 = vmatpush3.bf16.msra.mxu0 %v4792_v5  ;;  %v5427_v11 = vld [vmem:[%s5424_s20] sm:$0xff]  ;;  %v5430_v12 = vld [vmem:[%s5424_s20 + $0x8] sm:$0xff]  ;;  %4949 = vmatpush3.bf16.msra.mxu1 %v4792_v5  ;;  %v5435_v16 = vld [vmem:[%s5424_s20 + $0x10] sm:$0xff]  ;;  %v4820_v5 = vpack.c.bf16 %v3807_v60, %v3806_v59  ;;  %s3765_s21 = sshll.u32 %s551_s29, 3  ;;  %s533_s24 = sand.u32 1, %s5207_s19  }
  0x2a   : > { %4797 = vmatprep.subr.bf16.mxu0 %v4796_v8  ;;  %v607_v14 = vrot.slane %v5427_v11, 1  ;;  %v608_v15 = vrot.slane %v5430_v12, 1  ;;  %4946 = vmatprep.subr.bf16.mxu1 %v4796_v8  ;;  %v5444_v19 = vld [vmem:[%s5424_s20 + $0x18] sm:$0xff]  ;;  %v610_v21 = vrot.slane %v5435_v16, 1  ;;  %v5451_v24 = vld [vmem:[%s5424_s20 + $0x20] sm:$0xff]  ;;  %v5460_v27 = vld [vmem:[%s5424_s20 + $0x28] sm:$0xff]  ;;  %s553_s27 = scalar_lea.vmem %s6573_s1, %s3765_s21 }
  0x2b   : > { %v612_v23 = vrot.slane %v5444_v19, 1  ;;  %v614_v29 = vrot.slane %v5451_v24, 1  ;;  %v616_v32 = vrot.slane %v5460_v27, 1  ;;  %v5467_v33 = vld [vmem:[%s5424_s20 + $0x30] sm:$0xff]  ;;  %v5476_v36 = vld [vmem:[%s5424_s20 + $0x38] sm:$0xff]  ;;  %v5483_v39 = vld [vmem:[%s5424_s20 + $0x40] sm:$0xff] }
  0x2c   : > { %v609_v20 = vsel %vm606_vm0, %v607_v14, %v608_v15  ;;  %v611_v28 = vsel %vm606_vm0, %v608_v15, %v610_v21  ;;  %v618_v38 = vrot.slane %v5467_v33, 1  ;;  %v620_v44 = vrot.slane %v5476_v36, 1  ;;  %v5575_v25 = vld [vmem:[%s5424_s20 + $0x48] sm:$0xff]  ;;  %v5578_v26 = vld [vmem:[%s5424_s20 + $0x50] sm:$0xff]  ;;  %s3760_s29 = sshll.u32 %s533_s24, 7  ;;  %s6621_s17 = sld [smem:[#allocation16_spill]] }
  0x2d   : > { %4799 = vmatpush3.bf16.msra.mxu0 %v4796_v8  ;;  %4336 = vmatprep.mubr.msk.f32.mxu0 %vm640_vm1, %v609_v20  ;;  %v613_v30 = vsel %vm606_vm0, %v610_v21, %v612_v23  ;;  %v615_v37 = vsel %vm606_vm0, %v612_v23, %v614_v29  ;;  %v617_v42 = vsel %vm606_vm0, %v614_v29, %v616_v32  ;;  %v1241_v45 = vrot.slane %v5427_v11, 3  ;;  %v3811_v20 = vld [vmem:[%s6574_s2 + $0xa8] sm:$0xff]  ;;  %s4030_s14 = sshll.u32 %s5219_s22, 5 }
  0x2e   : > { %4801 = vmatprep.subr.bf16.mxu0 %v4800_v13  ;;  %4950 = vmatpush3.bf16.msra.mxu1 %v4796_v8  ;;  %v1242_v46 = vrot.slane %v5430_v12, 3  ;;  %v622_v47 = vrot.slane %v5483_v39, 1  ;;  %v1244_v49 = vrot.slane %v5435_v16, 3  ;;  %v1246_v50 = vrot.slane %v5444_v19, 3  ;;  %s3652_s15 = sadd.s32 %s4030_s14, %s5397_s30  ;;  %s6520_s30 = scalar_lea.sflag [#allocation3], %s533_s24 }
  0x2f   : > { %4947 = vmatprep.subr.bf16.mxu1 %v4800_v13  ;;  %v619_v51 = vsel %vm606_vm0, %v616_v32, %v618_v38  ;;  %v1248_v53 = vrot.slane %v5451_v24, 3  ;;  %v1250_v54 = vrot.slane %v5460_v27, 3  ;;  %v621_v55 = vsel %vm606_vm0, %v618_v38, %v620_v44  ;;  %v5593_v32 = vld [vmem:[%s5424_s20 + $0x58] sm:$0xff]  ;;  %s4031_s18 = sshll.u32 %s3652_s15, 7 }
  0x30   : > { %v5502_v52 = vsel %vm1240_vm2, %v1241_v45, %v1242_v46  ;;  %v5508_v56 = vsel %vm1240_vm2, %v1242_v46, %v1244_v49  ;;  %v5511_v57 = vsel %vm1240_vm2, %v1244_v49, %v1246_v50  ;;  %v1252_v58 = vrot.slane %v5467_v33, 3 }
  0x31   : > { %4803 = vmatpush3.bf16.msra.mxu0 %v4800_v13  ;;  %v5521_v61 = vsel %vm1240_vm2, %v1246_v50, %v1248_v53  ;;  %v5524_v62 = vsel %vm1240_vm2, %v1248_v53, %v1250_v54  ;;  %v1254_v63 = vrot.slane %v5476_v36, 3  ;;  %v6600_v0 = vrot.slane %v5483_v39, 3 }
  0x32   : > { %4805 = vmatprep.subr.bf16.mxu0 %v4804_v22  ;;  %4951 = vmatpush3.bf16.msra.mxu1 %v4800_v13  ;;  %v5530_v1 = vsel %vm1240_vm2, %v1250_v54, %v1252_v58  ;;  %v623_v2 = vsel %vm606_vm0, %v620_v44, %v622_v47  ;;  %v1477_v8 = vrot.slane %v5427_v11, 4  ;;  %v1478_v9 = vrot.slane %v5430_v12, 4  ;;  %v3813_v44 = vld [vmem:[%s6574_s2 + $0xb8] sm:$0xff] }
  0x33   : > { %v5537_v3 = vsel %vm1240_vm2, %v1252_v58, %v1254_v63  ;;  %v5542_v4 = vsel %vm1240_vm2, %v1254_v63, %v6600_v0  ;;  %v1480_v10 = vrot.slane %v5435_v16, 4  ;;  %v4824_v13 = vpack.c.bf16 %v3809_v7, %v3808_v6  ;;  %v3831_v58 = vld [vmem:[%s6574_s2 + $0xc8] sm:$0xff] }
  0x34   : > { %4337 = vmatmul.mubr.msk.f32.vlgmr.msra.gmra.mrb[0].mxu0 %vm640_vm1, %v611_v28  ;;  %v1482_v14 = vrot.slane %v5444_v19, 4  ;;  %v1484_v15 = vrot.slane %v5451_v24, 4  ;;  %v1486_v17 = vrot.slane %v5460_v27, 4  ;;  %v5566_v21 = vsel %vm1476_vm3, %v1477_v8, %v1478_v9 }
  0x35   : > { %4807 = vmatpush3.bf16.msra.mxu0 %v4804_v22  ;;  %4339 = vmatprep.mubr.msk.f32.mxu0 %vm640_vm1, %v613_v30  ;;  %v5569_v22 = vsel %vm1476_vm3, %v1478_v9, %v1480_v10  ;;  %v1488_v23 = vrot.slane %v5467_v33, 4  ;;  %v1492_v35 = vrot.slane %v5483_v39, 4  ;;  %v1496_v38 = vrot.slane %v5578_v26, 4 }
  0x36   : > { %4809 = vmatprep.subr.bf16.mxu0 %v4808_v31  ;;  %v5581_v28 = vsel %vm1476_vm3, %v1480_v10, %v1482_v14  ;;  %v5584_v29 = vsel %vm1476_vm3, %v1482_v14, %v1484_v15  ;;  %v5587_v30 = vsel %vm1476_vm3, %v1484_v15, %v1486_v17  ;;  %v4828_v40 = vpack.c.bf16 %v3811_v20, %v3810_v18 }
  0x37   : > { %v5596_v34 = vsel %vm1476_vm3, %v1486_v17, %v1488_v23  ;;  %v1714_v53 = vrot.slane %v5430_v12, 5  ;;  %v1716_v54 = vrot.slane %v5435_v16, 5  ;;  %v1718_v59 = vrot.slane %v5444_v19, 5 }
  0x38   : > { %4340 = vmatmul.mubr.msk.f32.gmra.mrb[2].mxu0 %vm640_vm1, %v615_v37  ;;  %v1494_v37 = vrot.slane %v5575_v25, 4  ;;  %v1724_v7 = vrot.slane %v5467_v33, 5  ;;  %v1726_v8 = vrot.slane %v5476_v36, 5  ;;  %v1728_v14 = vrot.slane %v5483_v39, 5 }
  0x39   : > { %4811 = vmatpush3.bf16.msra.mxu0 %v4808_v31  ;;  %4342 = vmatprep.mubr.msk.f32.mxu0 %vm640_vm1, %v617_v42  ;;  %v1490_v31 = vrot.slane %v5476_v36, 4  ;;  %v6599_v42 = vrot.slane %v5593_v32, 4  ;;  %v5645_v63 = vsel %vm1712_vm4, %v1714_v53, %v1716_v54  ;;  %v5652_v6 = vsel %vm1712_vm4, %v1716_v54, %v1718_v59 }
  0x3a   : > { %4813 = vmatprep.subr.bf16.mxu0 %v4812_v43  ;;  %v5615_v46 = vsel %vm1476_vm3, %v1492_v35, %v1494_v37  ;;  %v5667_v17 = vsel %vm1712_vm4, %v1724_v7, %v1726_v8  ;;  %v5672_v18 = vsel %vm1712_vm4, %v1726_v8, %v1728_v14  ;;  %v1730_v20 = vrot.slane %v5575_v25, 5 }
  0x3b   : > { %v5602_v41 = vsel %vm1476_vm3, %v1488_v23, %v1490_v31  ;;  %v5612_v45 = vsel %vm1476_vm3, %v1490_v31, %v1492_v35  ;;  %v5625_v49 = vsel %vm1476_vm3, %v1496_v38, %v6599_v42  ;;  %v1732_v23 = vrot.slane %v5578_v26, 5 }
  0x3c   : > { %4343 = vmatmul.mubr.msk.f32.gmra.mrb[4].mxu0 %vm640_vm1, %v619_v51  ;;  %v1713_v51 = vrot.slane %v5427_v11, 5  ;;  %v5679_v31 = vsel %vm1712_vm4, %v1728_v14, %v1730_v20  ;;  %v1008_v54 = vrot.slane %v5435_v16, 2  ;;  %v1012_v14 = vrot.slane %v5451_v24, 2 }
  0x3d   : > { %4815 = vmatpush3.bf16.msra.mxu0 %v4812_v43  ;;  %4345 = vmatprep.mubr.msk.f32.mxu0 %vm640_vm1, %v621_v55  ;;  %v3812_v43 = vld [vmem:[%s6574_s2 + $0xb0] sm:$0xff]  ;;  %v3830_v55 = vld [vmem:[%s6574_s2 + $0xc0] sm:$0xff]  ;;  %v5682_v35 = vsel %vm1712_vm4, %v1730_v20, %v1732_v23  ;;  %v1952_v20 = vrot.slane %v5435_v16, 6 }
  0x3e   : > { %4817 = vmatprep.subr.bf16.mxu0 %v4816_v48  ;;  %v4832_v50 = vpack.c.bf16 %v3813_v44, %v3812_v43  ;;  %v5642_v60 = vsel %vm1712_vm4, %v1713_v51, %v1714_v53  ;;  %v4836_v9 = vpack.c.bf16 %v3831_v58, %v3830_v55  ;;  %v5702_v43 = vld [vmem:[%s5424_s20 + $0x68] sm:$0xff]  ;;  %v5705_v44 = vld [vmem:[%s5424_s20 + $0x70] sm:$0xff]  ;;  %v1006_v51 = vrot.slane %v5430_v12, 2  ;;  %v5714_v53 = vld [vmem:[%s5424_s20 + $0x78] sm:$0xff] }
  0x3f   : > { %v1010_v58 = vrot.slane %v5444_v19, 2 }
  0x40   : > { %4346 = vmatmul.mubr.msk.f32.gmra.mrb[6].mxu0 %vm640_vm1, %v623_v2  ;;  %v1720_v2 = vrot.slane %v5451_v24, 5  ;;  %v1009_v8 = vsel %vm1004_vm5, %v1006_v51, %v1008_v54 }
  0x41   : > { %4819 = vmatpush3.bf16.msra.mxu0 %v4816_v48  ;;  %4376 = vmatprep.mubr.msk.f32.mxu0 %vm640_vm1, %v5427_v11  ;;  %v5618_v48 = vsel %vm1476_vm3, %v1494_v37, %v1496_v38  ;;  %v6598_v37 = vrot.slane %v5593_v32, 5  ;;  %v5690_v38 = vld [vmem:[%s5424_s20 + $0x60] sm:$0xff]  ;;  %s6623_s20 = sld [smem:[#allocation17_spill]] }
  0x42   : > { %4821 = vmatprep.subr.bf16.mxu0 %v4820_v5  ;;  %v5657_v10 = vsel %vm1712_vm4, %v1718_v59, %v1720_v2  ;;  %v3832_v59 = vld [vmem:[%s6574_s2 + $0xd0] sm:$0xff] }
  0x44   : > { %4377 = vmatmul.mubr.msk.f32.vlgmr.msra.gmra.mrb[0].mxu0 %vm640_vm1, %v5430_v12 }
  0x45   : > { %4823 = vmatpush3.bf16.msra.mxu0 %v4820_v5  ;;  %4379 = vmatprep.mubr.msk.f32.mxu0 %vm640_vm1, %v5435_v16  ;;  %v1722_v5 = vrot.slane %v5460_v27, 5  ;;  %v1954_v16 = vrot.slane %v5444_v19, 6 }
  0x46   : > { %4825 = vmatprep.subr.bf16.mxu0 %v4824_v13 }
  0x47   : > { %v5664_v15 = vsel %vm1712_vm4, %v1722_v5, %v1724_v7  ;;  %v1950_v7 = vrot.slane %v5430_v12, 6  ;;  %v3835_v12 = vld [vmem:[%s6574_s2 + $0xe8] sm:$0xff]  ;;  %s6511_s21 = scalar_lea.hbm %s6623_s20, %s4031_s18 }
  0x48   : > { %4380 = vmatmul.mubr.msk.f32.gmra.mrb[2].mxu0 %vm640_vm1, %v5444_v19  ;;  %v5757_v19 = vsel %vm1948_vm6, %v1952_v20, %v1954_v16 }
  0x49   : > { %4382 = vmatprep.mubr.msk.f32.mxu0 %vm640_vm1, %v5451_v24  ;;  %4827 = vmatpush3.bf16.msra.mxu0 %v4824_v13  ;;  %v5660_v13 = vsel %vm1712_vm4, %v1720_v2, %v1722_v5  ;;  %v3833_v2 = vld [vmem:[%s6574_s2 + $0xd8] sm:$0xff]  ;;  %v1949_v5 = vrot.slane %v5427_v11, 6 }
  0x4a   : > { %4829 = vmatprep.subr.bf16.mxu0 %v4828_v40 }
  0x4b   : > { %v5736_v42 = vsel %vm1948_vm6, %v1949_v5, %v1950_v7  ;;  %v1018_v5 = vrot.slane %v5476_v36, 2 }
  0x4c   : > { %4383 = vmatmul.mubr.msk.f32.gmra.mrb[4].mxu0 %vm640_vm1, %v5460_v27 }
  0x4d   : > { %4385 = vmatprep.mubr.msk.f32.mxu0 %vm640_vm1, %v5467_v33  ;;  %4831 = vmatpush3.bf16.msra.mxu0 %v4828_v40  ;;  %v5695_v40 = vsel %vm1712_vm4, %v1732_v23, %v6598_v37  ;;  %v1011_v23 = vsel %vm1004_vm5, %v1008_v54, %v1010_v58  ;;  %v4840_v37 = vpack.c.bf16 %v3833_v2, %v3832_v59  ;;  %v1956_v59 = vrot.slane %v5451_v24, 6 }
  0x4e   : > { %4833 = vmatprep.subr.bf16.mxu0 %v4832_v50  ;;  %v1013_v54 = vsel %vm1004_vm5, %v1010_v58, %v1012_v14  ;;  %v3837_v58 = vld [vmem:[%s6574_s2 + $0xf8] sm:$0xff] }
  0x4f   : > { %v5766_v24 = vsel %vm1948_vm6, %v1954_v16, %v1956_v59 }
  0x50   : > { %4386 = vmatmul.mubr.msk.f32.gmra.mrb[6].mxu0 %vm640_vm1, %v5476_v36 }
  0x51   : > { %4388 = vmatprep.mubr.msk.f32.mxu0 %vm640_vm1, %v5483_v39  ;;  %4835 = vmatpush3.bf16.msra.mxu0 %v4832_v50  ;;  %v1005_v50 = vrot.slane %v5427_v11, 2  ;;  %v3834_v11 = vld [vmem:[%s6574_s2 + $0xe0] sm:$0xff] }
  0x52   : > { %4837 = vmatprep.subr.bf16.mxu0 %v4836_v9 }
  0x53   : > { %v1007_v55 = vsel %vm1004_vm5, %v1005_v50, %v1006_v51  ;;  %v1014_v50 = vrot.slane %v5460_v27, 2  ;;  %v5745_v51 = vsel %vm1948_vm6, %v1950_v7, %v1952_v20  ;;  %v4844_v7 = vpack.c.bf16 %v3835_v12, %v3834_v11 }
  0x54   : > { %4389 = vmatmul.mubr.msk.f32.gmra.mrb[8].mxu0 %vm640_vm1, %v5575_v25  ;;  %v1020_v20 = vrot.slane %v5483_v39, 2  ;;  %v1022_v12 = vrot.slane %v5575_v25, 2 }
  0x55   : > { %4391 = vmatprep.mubr.msk.f32.mxu0 %vm640_vm1, %v5578_v26  ;;  %v1015_v2 = vsel %vm1004_vm5, %v1012_v14, %v1014_v50 }
  0x58   : > { %4392 = vmatmul.mubr.msk.f32.gmra.mrb[10].mxu0 %vm640_vm1, %v5593_v32 }
  0x59   : > { %4394 = vmatprep.mubr.msk.f32.mxu0 %vm640_vm1, %v5690_v38 }
  0x5c   : > { %4395 = vmatmul.mubr.msk.f32.gmra.mrb[12].mxu0 %vm640_vm1, %v5702_v43 }
  0x5d   : > { %4397 = vmatprep.mubr.msk.f32.mxu0 %vm640_vm1, %v5705_v44 }
  0x60   : > { %4398 = vmatmul.mubr.msk.f32.gmra.mrb[14].mxu0 %vm640_vm1, %v5714_v53 }
  0x61   : > { %4416 = vmatprep.mubr.msk.f32.mxu0 %vm640_vm1, %v1007_v55  ;;  %v1016_v55 = vrot.slane %v5467_v33, 2 }
  0x63   : > { %v1017_v14 = vsel %vm1004_vm5, %v1014_v50, %v1016_v55  ;;  %v1019_v11 = vsel %vm1004_vm5, %v1016_v55, %v1018_v5  ;;  %v3855_v50 = vld [vmem:[%s6574_s2 + $0x108] sm:$0xff]  ;;  %v1021_v55 = vsel %vm1004_vm5, %v1018_v5, %v1020_v20  ;;  %v624_v5 = vrot.slane %v5575_v25, 1 }
  0x64   : > { %4417 = vmatmul.mubr.msk.f32.vlgmr.msra.gmra.mrb[0].mxu0 %vm640_vm1, %v1009_v8  ;;  %v1958_v8 = vrot.slane %v5460_v27, 6 }
  0x65   : > { %4839 = vmatpush3.bf16.msra.mxu0 %v4836_v9  ;;  %4419 = vmatprep.mubr.msk.f32.mxu0 %vm640_vm1, %v1011_v23  ;;  %v3836_v9 = vld [vmem:[%s6574_s2 + $0xf0] sm:$0xff]  ;;  %v1960_v23 = vrot.slane %v5467_v33, 6 }
  0x66   : > { %4841 = vmatprep.subr.bf16.mxu0 %v4840_v37  ;;  %v4848_v16 = vpack.c.bf16 %v3837_v58, %v3836_v9  ;;  %v5781_v27 = vsel %vm1948_vm6, %v1956_v59, %v1958_v8  ;;  %v1024_v59 = vrot.slane %v5578_v26, 2  ;;  %v1023_v9 = vsel %vm1004_vm5, %v1020_v20, %v1022_v12 }
  0x67   : > { %v5790_v33 = vsel %vm1948_vm6, %v1958_v8, %v1960_v23  ;;  %v1026_v58 = vrot.slane %v5593_v32, 2  ;;  %v626_v20 = vrot.slane %v5578_v26, 1 }
  0x68   : > { %4420 = vmatmul.mubr.msk.f32.gmra.mrb[2].mxu0 %vm640_vm1, %v1013_v54  ;;  %v1962_v54 = vrot.slane %v5476_v36, 6 }
  0x69   : > { %4422 = vmatprep.mubr.msk.f32.mxu0 %vm640_vm1, %v1015_v2  ;;  %4843 = vmatpush3.bf16.msra.mxu0 %v4840_v37  ;;  %v3854_v37 = vld [vmem:[%s6574_s2 + $0x100] sm:$0xff]  ;;  %v1964_v2 = vrot.slane %v5483_v39, 6 }
  0x6a   : > { %4845 = vmatprep.subr.bf16.mxu0 %v4844_v7  ;;  %v5800_v8 = vpack.c.bf16 %v3855_v50, %v3854_v37  ;;  %v1028_v37 = vrot.slane %v5690_v38, 2  ;;  %v1968_v50 = vrot.slane %v5578_v26, 6 }
  0x6b   : > { %v5806_v36 = vsel %vm1948_vm6, %v1962_v54, %v1964_v2 }
  0x6c   : > { %4423 = vmatmul.mubr.msk.f32.gmra.mrb[4].mxu0 %vm640_vm1, %v1017_v14  ;;  %v5803_v14 = vsel %vm1948_vm6, %v1960_v23, %v1962_v54  ;;  %v625_v23 = vsel %vm606_vm0, %v622_v47, %v624_v5  ;;  %v1027_v54 = vsel %vm1004_vm5, %v1024_v59, %v1026_v58 }
  0x6d   : > { %4425 = vmatprep.mubr.msk.f32.mxu0 %vm640_vm1, %v1019_v11  ;;  %4847 = vmatpush3.bf16.msra.mxu0 %v4844_v7  ;;  %v1966_v7 = vrot.slane %v5575_v25, 6  ;;  %v1025_v11 = vsel %vm1004_vm5, %v1022_v12, %v1024_v59  ;;  %v627_v12 = vsel %vm606_vm0, %v624_v5, %v626_v20  ;;  %v1970_v59 = vrot.slane %v5593_v32, 6 }
  0x6e   : > { %4849 = vmatprep.subr.bf16.mxu0 %v4848_v16  ;;  %4348 = vmatprep.mubr.msk.f32.mxu1 %vm640_vm1, %v625_v23  ;;  %v1029_v5 = vsel %vm1004_vm5, %v1026_v58, %v1028_v37  ;;  %v1032_v23 = vrot.slane %v5705_v44, 2  ;;  %v632_v58 = vrot.slane %v5702_v43, 1 }
  0x6f   : > { %4349 = vmatmul.mubr.msk.f32.vlgmr.msra.gmra.mrb[0].mxu1 %vm640_vm1, %v627_v12  ;;  %v5832_v47 = vsel %vm1948_vm6, %v1966_v7, %v1968_v50 }
  0x70   : > { %4426 = vmatmul.mubr.msk.f32.gmra.mrb[6].mxu0 %vm640_vm1, %v1021_v55  ;;  %v1030_v55 = vrot.slane %v5702_v43, 2  ;;  %6615 = vst [vmem:[#allocation15_spill] sm:$0xff] %v5832_v47  ;;  %v5844_v47 = vld [vmem:[%s553_s27] sm:$0xff]  ;;  %s6490_s27 = scalar_lea.vmem [#allocation2], %s3760_s29  ;;  %s6624_s29 = smov %s6623_s20 }
  0x71   : > { %4428 = vmatprep.mubr.msk.f32.mxu0 %vm640_vm1, %v1023_v9  ;;  %4851 = vmatpush3.bf16.msra.mxu0 %v4848_v16  ;;  %v5824_v9 = vsel %vm1948_vm6, %v1964_v2, %v1966_v7  ;;  %v628_v16 = vrot.slane %v5593_v32, 1  ;;  %v630_v2 = vrot.slane %v5690_v38, 1  ;;  %v1034_v7 = vrot.slane %v5714_v53, 2  ;;  %s3655_s22 = sshll.u32 %s6490_s27, 4  ;;  %s6514_s22 = int_to_ptr.vmem [resolvable:$true] %s3655_s22 }
  0x72   : > { %4853 = vmatprep.subr.bf16.mxu0 %v5800_v8  ;;  %6614 = vst [vmem:[#allocation14_spill] sm:$0xff] %v5824_v9  ;;  %v1031_v12 = vsel %vm1004_vm5, %v1028_v37, %v1030_v55  ;;  %v1033_v37 = vsel %vm1004_vm5, %v1030_v55, %v1032_v23  ;;  %s5137_s28 = scalar_lea.vmem %s6514_s22, 2048 }
  0x73   : > { %v629_v0 = vsel %vm606_vm0, %v626_v20, %v628_v16  ;;  %v634_v20 = vrot.slane %v5705_v44, 1  ;;  %v633_v9 = vsel %vm606_vm0, %v630_v2, %v632_v58  ;;  %p5138_p1 = scmp.ne.s32.totalorder %s6514_s22, %s5137_s28 }
  0x74   : > { %4429 = vmatmul.mubr.msk.f32.gmra.mrb[8].mxu0 %vm640_vm1, %v1025_v11  ;;  %4351 = vmatprep.mubr.msk.f32.mxu1 %vm640_vm1, %v629_v0  ;;  %v5850_v11 = vsel %vm1948_vm6, %v1968_v50, %v1970_v59  ;;  %v1036_v0 = vrot.slane %v5844_v47, 2  ;;  %v1035_v50 = vsel %vm1004_vm5, %v1032_v23, %v1034_v7  ;;  %v3856_v23 = vld [vmem:[%s6574_s2 + $0x110] sm:$0xff] }
  0x75   : > { %4431 = vmatprep.mubr.msk.f32.mxu0 %vm640_vm1, %v1027_v54  ;;  %v631_v54 = vsel %vm606_vm0, %v628_v16, %v630_v2  ;;  %v635_v16 = vsel %vm606_vm0, %v632_v58, %v634_v20  ;;  %v2247_v58 = vld [vmem:[%s6576_s4 + $0x8] sm:$0xff]  ;;  %p5139_p2 = pnand %p5138_p1, %p5367_p3 }
  0x76   : > { %4352 = vmatmul.mubr.msk.f32.gmra.mrb[2].mxu1 %vm640_vm1, %v631_v54  ;;  %v1037_v55 = vsel %vm1004_vm5, %v1034_v7, %v1036_v0  ;;  %v3857_v54 = vld [vmem:[%s6574_s2 + $0x118] sm:$0xff]  ;;  %v2246_v7 = vld [vmem:[%s6576_s4] sm:$0xff] }
  0x77   : > { %4354 = vmatprep.mubr.msk.f32.mxu1 %vm640_vm1, %v633_v9  ;;  %v3858_v0 = vld [vmem:[%s6574_s2 + $0x120] sm:$0xff]  ;;  %p5140_p4 = pneg %p5139_p2 }
  0x78   : > { %4432 = vmatmul.mubr.msk.f32.gmra.mrb[10].mxu0 %vm640_vm1, %v1029_v5  ;;  %v636_v5 = vrot.slane %v5714_v53, 1 }
  0x79   : > { %4434 = vmatprep.mubr.msk.f32.mxu0 %vm640_vm1, %v1031_v12  ;;  %v638_v12 = vrot.slane %v5844_v47, 1 }
  0x7a   : > { %4355 = vmatmul.mubr.msk.f32.gmra.mrb[4].mxu1 %vm640_vm1, %v635_v16  ;;  %v637_v2 = vsel %vm606_vm0, %v634_v20, %v636_v5  ;;  %v4900_v20 = vpack.c.bf16 %v2247_v58, %v2246_v7  ;;  %v1262_v7 = vrot.slane %v5593_v32, 3 }
  0x7b   : > { %4357 = vmatprep.mubr.msk.f32.mxu1 %vm640_vm1, %v637_v2  ;;  %v639_v9 = vsel %vm606_vm0, %v636_v5, %v638_v12  ;;  %v3860_v5 = vld [vmem:[%s6574_s2 + $0x130] sm:$0xff]  ;;  %v3861_v12 = vld [vmem:[%s6574_s2 + $0x138] sm:$0xff]  ;;  %v3878_v2 = vld [vmem:[%s6574_s2 + $0x140] sm:$0xff] }
  0x7c   : > { %4435 = vmatmul.mubr.msk.f32.gmra.mrb[12].mxu0 %vm640_vm1, %v1033_v37  ;;  %v4856_v37 = vpack.c.bf16 %v3857_v54, %v3856_v23  ;;  %4901 = vmatprep.subr.bf16.mxu1 %v4900_v20  ;;  %v1260_v23 = vrot.slane %v5578_v26, 3  ;;  %v1264_v26 = vrot.slane %v5690_v38, 3 }
  0x7d   : > { %4437 = vmatprep.mubr.msk.f32.mxu0 %vm640_vm1, %v1035_v50  ;;  %v3859_v50 = vld [vmem:[%s6574_s2 + $0x128] sm:$0xff]  ;;  %4903 = vmatpush3.bf16.msra.mxu1 %v4900_v20 }
  0x7e   : > { %4358 = vmatmul.mubr.msk.f32.gmra.mrb[6].mxu1 %vm640_vm1, %v639_v9  ;;  %v4860_v16 = vpack.c.bf16 %v3859_v50, %v3858_v0  ;;  %v3879_v9 = vld [vmem:[%s6574_s2 + $0x148] sm:$0xff]  ;;  %v5945_v0 = vsel %vm1240_vm2, %v1262_v7, %v1264_v26  ;;  %v1268_v50 = vrot.slane %v5705_v44, 3 }
  0x7f   : > { %v4868_v58 = vpack.c.bf16 %v3879_v9, %v3878_v2  ;;  %v3880_v9 = vld [vmem:[%s6574_s2 + $0x150] sm:$0xff] }
  0x80   : > { %4438 = vmatmul.mubr.msk.f32.gmra.mrb[14].mxu0 %vm640_vm1, %v1037_v55  ;;  %v4864_v55 = vpack.c.bf16 %v3861_v12, %v3860_v5  ;;  %v1270_v5 = vrot.slane %v5714_v53, 3 }
  0x81   : > { %4456 = vmatprep.mubr.msk.f32.mxu0 %vm640_vm1, %v5502_v52 }
  0x84   : > { %4457 = vmatmul.mubr.msk.f32.vlgmr.msra.gmra.mrb[0].mxu0 %vm640_vm1, %v5508_v56 }
  0x85   : > { %4855 = vmatpush3.bf16.msra.mxu0 %v5800_v8  ;;  %4459 = vmatprep.mubr.msk.f32.mxu0 %vm640_vm1, %v5511_v57  ;;  %v1258_v8 = vrot.slane %v5575_v25, 3  ;;  %v6616_v25 = vrot.slane %v5483_v39, 3  ;;  %v5937_v39 = vsel %vm1240_vm2, %v1260_v23, %v1262_v7  ;;  %v3882_v7 = vld [vmem:[%s6574_s2 + $0x160] sm:$0xff] }
  0x86   : > { %4857 = vmatprep.subr.bf16.mxu0 %v4856_v37 }
  0x87   : > { %v5925_v54 = vsel %vm1240_vm2, %v6616_v25, %v1258_v8  ;;  %v5933_v20 = vsel %vm1240_vm2, %v1258_v8, %v1260_v23  ;;  %v1272_v8 = vrot.slane %v5844_v47, 3  ;;  %v3881_v23 = vld [vmem:[%s6574_s2 + $0x158] sm:$0xff] }
  0x88   : > { %4460 = vmatmul.mubr.msk.f32.gmra.mrb[2].mxu0 %vm640_vm1, %v5521_v61  ;;  %v4872_v25 = vpack.c.bf16 %v3881_v23, %v3880_v9 }
  0x89   : > { %4462 = vmatprep.mubr.msk.f32.mxu0 %vm640_vm1, %v5524_v62  ;;  %4859 = vmatpush3.bf16.msra.mxu0 %v4856_v37  ;;  %v1266_v37 = vrot.slane %v5702_v43, 3  ;;  %v5968_v2 = vsel %vm1240_vm2, %v1270_v5, %v1272_v8  ;;  %v1506_v8 = vrot.slane %v5714_v53, 4 }
  0x8a   : > { %4861 = vmatprep.subr.bf16.mxu0 %v4860_v16 }
  0x8b   : > { %v5957_v12 = vsel %vm1240_vm2, %v1266_v37, %v1268_v50 }
  0x8c   : > { %4463 = vmatmul.mubr.msk.f32.gmra.mrb[4].mxu0 %vm640_vm1, %v5530_v1 }
  0x8d   : > { %4465 = vmatprep.mubr.msk.f32.mxu0 %vm640_vm1, %v5537_v3  ;;  %4863 = vmatpush3.bf16.msra.mxu0 %v4860_v16  ;;  %v5949_v16 = vsel %vm1240_vm2, %v1264_v26, %v1266_v37  ;;  %v3883_v26 = vld [vmem:[%s6574_s2 + $0x168] sm:$0xff] }
  0x8e   : > { %4865 = vmatprep.subr.bf16.mxu0 %v4864_v55  ;;  %v4876_v37 = vpack.c.bf16 %v3883_v26, %v3882_v7  ;;  %v3905_v7 = vld [vmem:[%s6574_s2 + $0x198] sm:$0xff] }
  0x90   : > { %4466 = vmatmul.mubr.msk.f32.gmra.mrb[6].mxu0 %vm640_vm1, %v5542_v4 }
  0x91   : > { %4468 = vmatprep.mubr.msk.f32.mxu0 %vm640_vm1, %v5925_v54  ;;  %4867 = vmatpush3.bf16.msra.mxu0 %v4864_v55  ;;  %v5961_v55 = vsel %vm1240_vm2, %v1268_v50, %v1270_v5  ;;  %v3885_v50 = vld [vmem:[%s6574_s2 + $0x178] sm:$0xff]  ;;  %v1502_v5 = vrot.slane %v5702_v43, 4 }
  0x92   : > { %4869 = vmatprep.subr.bf16.mxu0 %v4868_v58 }
  0x94   : > { %4469 = vmatmul.mubr.msk.f32.gmra.mrb[8].mxu0 %vm640_vm1, %v5933_v20 }
  0x95   : > { %4471 = vmatprep.mubr.msk.f32.mxu0 %vm640_vm1, %v5937_v39 }
  0x98   : > { %4472 = vmatmul.mubr.msk.f32.gmra.mrb[10].mxu0 %vm640_vm1, %v5945_v0 }
  0x99   : > { %4474 = vmatprep.mubr.msk.f32.mxu0 %vm640_vm1, %v5949_v16 }
  0x9c   : > { %4475 = vmatmul.mubr.msk.f32.gmra.mrb[12].mxu0 %vm640_vm1, %v5957_v12 }
  0x9d   : > { %4477 = vmatprep.mubr.msk.f32.mxu0 %vm640_vm1, %v5961_v55 }
  0xa0   : > { %4478 = vmatmul.mubr.msk.f32.gmra.mrb[14].mxu0 %vm640_vm1, %v5968_v2 }
  0xa1   : > { %4496 = vmatprep.mubr.msk.f32.mxu0 %vm640_vm1, %v5566_v21  ;;  %v3884_v21 = vld [vmem:[%s6574_s2 + $0x170] sm:$0xff] }
  0xa4   : > { %4497 = vmatmul.mubr.msk.f32.vlgmr.msra.gmra.mrb[0].mxu0 %vm640_vm1, %v5569_v22  ;;  %v4880_v22 = vpack.c.bf16 %v3885_v50, %v3884_v21  ;;  %v3907_v21 = vld [vmem:[%s6574_s2 + $0x1a8] sm:$0xff] }
  0xa5   : > { %4871 = vmatpush3.bf16.msra.mxu0 %v4868_v58  ;;  %4499 = vmatprep.mubr.msk.f32.mxu0 %vm640_vm1, %v5581_v28  ;;  %v3902_v28 = vld [vmem:[%s6574_s2 + $0x180] sm:$0xff]  ;;  %v3903_v58 = vld [vmem:[%s6574_s2 + $0x188] sm:$0xff] }
  0xa6   : > { %4873 = vmatprep.subr.bf16.mxu0 %v4872_v25 }
  0xa8   : > { %4500 = vmatmul.mubr.msk.f32.gmra.mrb[2].mxu0 %vm640_vm1, %v5584_v29  ;;  %v4884_v29 = vpack.c.bf16 %v3903_v58, %v3902_v28 }
  0xa9   : > { %4502 = vmatprep.mubr.msk.f32.mxu0 %vm640_vm1, %v5587_v30  ;;  %4875 = vmatpush3.bf16.msra.mxu0 %v4872_v25  ;;  %v1500_v30 = vrot.slane %v5690_v38, 4  ;;  %v3904_v25 = vld [vmem:[%s6574_s2 + $0x190] sm:$0xff] }
  0xaa   : > { %4877 = vmatprep.subr.bf16.mxu0 %v4876_v37  ;;  %v4888_v26 = vpack.c.bf16 %v3905_v7, %v3904_v25 }
  0xac   : > { %4503 = vmatmul.mubr.msk.f32.gmra.mrb[4].mxu0 %vm640_vm1, %v5596_v34  ;;  %v6617_v34 = vrot.slane %v5593_v32, 4 }
  0xad   : > { %4505 = vmatprep.mubr.msk.f32.mxu0 %vm640_vm1, %v5602_v41  ;;  %4879 = vmatpush3.bf16.msra.mxu0 %v4876_v37  ;;  %v3906_v37 = vld [vmem:[%s6574_s2 + $0x1a0] sm:$0xff] }
  0xae   : > { %4881 = vmatprep.subr.bf16.mxu0 %v4880_v22  ;;  %v1501_v41 = vsel %vm1476_vm3, %v6617_v34, %v1500_v30  ;;  %v4892_v50 = vpack.c.bf16 %v3907_v21, %v3906_v37  ;;  %v2501_v21 = vld [vmem:[%s6578_s6 + $0x10] sm:$0xff] }
  0xb0   : > { %4506 = vmatmul.mubr.msk.f32.gmra.mrb[6].mxu0 %vm640_vm1, %v5612_v45  ;;  %v1504_v45 = vrot.slane %v5705_v44, 4 }
  0xb1   : > { %4508 = vmatprep.mubr.msk.f32.mxu0 %vm640_vm1, %v5615_v46  ;;  %4883 = vmatpush3.bf16.msra.mxu0 %v4880_v22  ;;  %v1503_v46 = vsel %vm1476_vm3, %v1500_v30, %v1502_v5  ;;  %v3909_v22 = vld [vmem:[%s6574_s2 + $0x1b8] sm:$0xff] }
  0xb2   : > { %4885 = vmatprep.subr.bf16.mxu0 %v4884_v29  ;;  %v1505_v9 = vsel %vm1476_vm3, %v1502_v5, %v1504_v45 }
  0xb4   : > { %4509 = vmatmul.mubr.msk.f32.gmra.mrb[8].mxu0 %vm640_vm1, %v5618_v48  ;;  %v1508_v48 = vrot.slane %v5844_v47, 4 }
  0xb5   : > { %4511 = vmatprep.mubr.msk.f32.mxu0 %vm640_vm1, %v5625_v49  ;;  %v1507_v49 = vsel %vm1476_vm3, %v1504_v45, %v1506_v8 }
  0xb6   : > { %v1509_v23 = vsel %vm1476_vm3, %v1506_v8, %v1508_v48 }
  0xb8   : > { %4512 = vmatmul.mubr.msk.f32.gmra.mrb[10].mxu0 %vm640_vm1, %v1501_v41 }
  0xb9   : > { %4514 = vmatprep.mubr.msk.f32.mxu0 %vm640_vm1, %v1503_v46 }
  0xbc   : > { %4515 = vmatmul.mubr.msk.f32.gmra.mrb[12].mxu0 %vm640_vm1, %v1505_v9 }
  0xbd   : > { %4517 = vmatprep.mubr.msk.f32.mxu0 %vm640_vm1, %v1507_v49  ;;  %v6162_v49 = vld [vmem:[%s6575_s3] ss:$0 sm:$0xff] }
  0xc0   : > { %4518 = vmatmul.mubr.msk.f32.gmra.mrb[14].mxu0 %vm640_vm1, %v1509_v23 }
  0xc1   : > { %4536 = vmatprep.mubr.msk.f32.mxu0 %vm640_vm1, %v5642_v60  ;;  %v3908_v60 = vld [vmem:[%s6574_s2 + $0x1b0] sm:$0xff] }
  0xc4   : > { %4537 = vmatmul.mubr.msk.f32.vlgmr.msra.gmra.mrb[0].mxu0 %vm640_vm1, %v5645_v63  ;;  %v4896_v63 = vpack.c.bf16 %v3909_v22, %v3908_v60 }
  0xc5   : > { %4887 = vmatpush3.bf16.msra.mxu0 %v4884_v29  ;;  %4539 = vmatprep.mubr.msk.f32.mxu0 %vm640_vm1, %v5652_v6  ;;  %v1736_v6 = vrot.slane %v5690_v38, 5  ;;  %v2500_v29 = vld [vmem:[%s6578_s6 + $0x8] sm:$0xff] }
  0xc6   : > { %4889 = vmatprep.subr.bf16.mxu0 %v4888_v26 }
  0xc8   : > { %4540 = vmatmul.mubr.msk.f32.gmra.mrb[2].mxu0 %vm640_vm1, %v5657_v10  ;;  %v1738_v10 = vrot.slane %v5702_v43, 5 }
  0xc9   : > { %4542 = vmatprep.mubr.msk.f32.mxu0 %vm640_vm1, %v5660_v13  ;;  %4891 = vmatpush3.bf16.msra.mxu0 %v4888_v26  ;;  %v6618_v13 = vrot.slane %v5593_v32, 5 }
  0xca   : > { %4893 = vmatprep.subr.bf16.mxu0 %v4892_v50 }
  0xcc   : > { %4543 = vmatmul.mubr.msk.f32.gmra.mrb[4].mxu0 %vm640_vm1, %v5664_v15  ;;  %v1737_v15 = vsel %vm1712_vm4, %v6618_v13, %v1736_v6 }
  0xcd   : > { %4545 = vmatprep.mubr.msk.f32.mxu0 %vm640_vm1, %v5667_v17  ;;  %4895 = vmatpush3.bf16.msra.mxu0 %v4892_v50  ;;  %v1740_v17 = vrot.slane %v5705_v44, 5  ;;  %v2502_v50 = vld [vmem:[%s6578_s6 + $0x18] sm:$0xff] }
  0xce   : > { %4897 = vmatprep.subr.bf16.mxu0 %v4896_v63 }
  0xcf   : > { %v1741_v28 = vsel %vm1712_vm4, %v1738_v10, %v1740_v17 }
  0xd0   : > { %4546 = vmatmul.mubr.msk.f32.gmra.mrb[6].mxu0 %vm640_vm1, %v5672_v18  ;;  %v1739_v18 = vsel %vm1712_vm4, %v1736_v6, %v1738_v10 }
  0xd1   : > { %4548 = vmatprep.mubr.msk.f32.mxu0 %vm640_vm1, %v5679_v31  ;;  %4899 = vmatpush3.bf16.msra.mxu0 %v4896_v63  ;;  %v1742_v31 = vrot.slane %v5714_v53, 5 }
  0xd4   : > { %4549 = vmatmul.mubr.msk.f32.gmra.mrb[8].mxu0 %vm640_vm1, %v5682_v35  ;;  %v1744_v35 = vrot.slane %v5844_v47, 5 }
  0xd5   : > { %4551 = vmatprep.mubr.msk.f32.mxu0 %vm640_vm1, %v5695_v40  ;;  %v1743_v40 = vsel %vm1712_vm4, %v1740_v17, %v1742_v31 }
  0xd6   : > { %v1745_v58 = vsel %vm1712_vm4, %v1742_v31, %v1744_v35  ;;  %v2503_v31 = vld [vmem:[%s6578_s6 + $0x20] sm:$0xff] }
  0xd8   : > { %4552 = vmatmul.mubr.msk.f32.gmra.mrb[10].mxu0 %vm640_vm1, %v1737_v15  ;;  %v4912_v15 = vpack.c.bf16 %v2502_v50, %v2501_v21 }
  0xd9   : > { %4554 = vmatprep.mubr.msk.f32.mxu0 %vm640_vm1, %v1739_v18 }
  0xdc   : > { %4555 = vmatmul.mubr.msk.f32.gmra.mrb[12].mxu0 %vm640_vm1, %v1741_v28  ;;  %v2504_v28 = vld [vmem:[%s6578_s6 + $0x28] sm:$0xff] }
  0xdd   : > { %4557 = vmatprep.mubr.msk.f32.mxu0 %vm640_vm1, %v1743_v40 }
  0xe0   : > { %4558 = vmatmul.mubr.msk.f32.gmra.mrb[14].mxu0 %vm640_vm1, %v1745_v58 }
  0xe1   : > { %4576 = vmatprep.mubr.msk.f32.mxu0 %vm640_vm1, %v5736_v42  ;;  %v6619_v42 = vld [vmem:[#allocation14_spill] sm:$0xff] }
  0xe4   : > { %4577 = vmatmul.mubr.msk.f32.vlgmr.msra.gmra.mrb[0].mxu0 %vm640_vm1, %v5745_v51  ;;  %v1972_v51 = vrot.slane %v5690_v38, 6 }
  0xe5   : > { %4579 = vmatprep.mubr.msk.f32.mxu0 %vm640_vm1, %v5757_v19  ;;  %v1974_v19 = vrot.slane %v5702_v43, 6  ;;  %v1980_v43 = vrot.slane %v5844_v47, 6  ;;  %v2499_v47 = vld [vmem:[%s6578_s6] sm:$0xff] }
  0xe6   : > { %v4908_v30 = vpack.c.bf16 %v2500_v29, %v2499_v47 }
  0xe8   : > { %4580 = vmatmul.mubr.msk.f32.gmra.mrb[2].mxu0 %vm640_vm1, %v5766_v24  ;;  %v6620_v24 = vld [vmem:[#allocation15_spill] sm:$0xff] }
  0xe9   : > { %4582 = vmatprep.mubr.msk.f32.mxu0 %vm640_vm1, %v5781_v27  ;;  %v1973_v27 = vsel %vm1948_vm6, %v1970_v59, %v1972_v51 }
  0xec   : > { %4583 = vmatmul.mubr.msk.f32.gmra.mrb[4].mxu0 %vm640_vm1, %v5790_v33  ;;  %v1976_v33 = vrot.slane %v5705_v44, 6  ;;  %v2248_v44 = vld [vmem:[%s6576_s4 + $0x10] sm:$0xff] }
  0xed   : > { %4585 = vmatprep.mubr.msk.f32.mxu0 %vm640_vm1, %v5803_v14  ;;  %v1975_v14 = vsel %vm1948_vm6, %v1972_v51, %v1974_v19 }
  0xee   : > { %v1977_v38 = vsel %vm1948_vm6, %v1974_v19, %v1976_v33 }
  0xf0   : > { %4586 = vmatmul.mubr.msk.f32.gmra.mrb[6].mxu0 %vm640_vm1, %v5806_v36  ;;  %v1978_v36 = vrot.slane %v5714_v53, 6  ;;  %v2249_v53 = vld [vmem:[%s6576_s4 + $0x18] sm:$0xff] }
  0xf1   : > { %4588 = vmatprep.mubr.msk.f32.mxu0 %vm640_vm1, %v6619_v42  ;;  %v4904_v59 = vpack.c.bf16 %v2249_v53, %v2248_v44 }
  0xf2   : > { %v1981_v32 = vsel %vm1948_vm6, %v1978_v36, %v1980_v43 }
  0xf3   : > { %4905 = vmatprep.subr.bf16.mxu1 %v4904_v59 }
  0xf4   : > { %4589 = vmatmul.mubr.msk.f32.gmra.mrb[8].mxu0 %vm640_vm1, %v6620_v24  ;;  %4907 = vmatpush3.bf16.msra.mxu1 %v4904_v59  ;;  %v4916_v24 = vpack.c.bf16 %v2504_v28, %v2503_v31 }
  0xf5   : > { %4591 = vmatprep.mubr.msk.f32.mxu0 %vm640_vm1, %v5850_v11  ;;  %v1979_v11 = vsel %vm1948_vm6, %v1976_v33, %v1978_v36  ;;  %4909 = vmatprep.subr.bf16.mxu1 %v4908_v30  ;;  %v2506_v36 = vld [vmem:[%s6578_s6 + $0x38] sm:$0xff] }
  0xf8   : > { %4592 = vmatmul.mubr.msk.f32.gmra.mrb[10].mxu0 %vm640_vm1, %v1973_v27 }
  0xf9   : > { %4594 = vmatprep.mubr.msk.f32.mxu0 %vm640_vm1, %v1975_v14  ;;  %v2505_v14 = vld [vmem:[%s6578_s6 + $0x30] sm:$0xff] }
  0xfa   : > { %v4920_v59 = vpack.c.bf16 %v2506_v36, %v2505_v14 }
  0xfc   : > { %4595 = vmatmul.mubr.msk.f32.gmra.mrb[12].mxu0 %vm640_vm1, %v1977_v38 }
  0xfd   : > { %4597 = vmatprep.mubr.msk.f32.mxu0 %vm640_vm1, %v1979_v11 }
 0x100   : > { %4598 = vmatmul.mubr.msk.f32.gmra.mrb[14].mxu0 %vm640_vm1, %v1981_v32 }
 0x142   : > { %v6143_v5 = vpop.f32.mrb[0].mxu1 }
 0x143   : > { %v6145_v34 = vpop.f32.mrb[1].mxu1 }
 0x149   : > { %v6147_v41 = vpop.f32.mrb[2].mxu1 }
 0x14a   : > { %v6149_v45 = vpop.f32.mrb[3].mxu1 }
 0x14d   : > { %v6151_v46 = vpop.f32.mrb[4].mxu1 }
 0x14e   : > { %v6153_v8 = vpop.f32.mrb[5].mxu1 }
 0x151   : > { %v6155_v9 = vpop.f32.mrb[6].mxu1 }
 0x152   : > { %v6157_v48 = vpop.f32.mrb[7].mxu1 }
 0x1b7   : > { %v4578_v23 = vpop.f32.mrb[0].mxu0 }
 0x1b8   : > { %v2183_v25 = vadd.f32 %v4578_v23, %v6162_v49  ;;  %v2080_v7 = vpop.f32.mrb[1].mxu0 }
 0x1b9   : > { %v2182_v26 = vadd.f32 %v6162_v49, %v2080_v7 }
 0x1ba   : > { %v2215_v37 = vmul.f32 0.01, %v2183_v25  ;;  %vm2199_vm7 = vcmp.gt.f32.partialorder %v2183_v25, 0.0 }
 0x1bb   : > { %vm2198_vm8 = vcmp.gt.f32.partialorder %v2182_v26, 0.0  ;;  %v2214_v60 = vmul.f32 0.01, %v2182_v26  ;;  %v4581_v22 = vpop.f32.mrb[2].mxu0 }
 0x1bc   : > { %v2185_v63 = vadd.f32 %v4581_v22, %v6162_v49  ;;  %v2090_v6 = vpop.f32.mrb[3].mxu0  ;;  %v2231_v17 = vsel %vm2199_vm7, %v2183_v25, %v2215_v37 }
 0x1bd   : > { %v2184_v10 = vadd.f32 %v6162_v49, %v2090_v6  ;;  %v2230_v13 = vsel %vm2198_vm8, %v2182_v26, %v2214_v60 }
 0x1be   : > { %v2217_v18 = vmul.f32 0.01, %v2185_v63  ;;  %4608 = vmatprep.mubr.msk.f32.mxu1 %vm2257_vm9, %v2230_v13  ;;  %vm2201_vm10 = vcmp.gt.f32.partialorder %v2185_v63, 0.0 }
 0x1bf   : > { %vm2200_vm11 = vcmp.gt.f32.partialorder %v2184_v10, 0.0  ;;  %v2216_v35 = vmul.f32 0.01, %v2184_v10  ;;  %v4584_v40 = vpop.f32.mrb[4].mxu0  ;;  %4609 = vmatmul.mubr.msk.f32.vlgmr.msra.gmra.mrb[8].mxu1 %vm2257_vm9, %v2231_v17 }
 0x1c0   : > { %v2187_v58 = vadd.f32 %v4584_v40, %v6162_v49  ;;  %v2100_v42 = vpop.f32.mrb[5].mxu0  ;;  %4911 = vmatpush3.bf16.msra.mxu1 %v4908_v30  ;;  %v2233_v33 = vsel %vm2201_vm10, %v2185_v63, %v2217_v18 }
 0x1c1   : > { %v2186_v51 = vadd.f32 %v6162_v49, %v2100_v42  ;;  %v2232_v19 = vsel %vm2200_vm11, %v2184_v10, %v2216_v35  ;;  %4913 = vmatprep.subr.bf16.mxu1 %v4912_v15 }
 0x1c2   : > { %v2219_v27 = vmul.f32 0.01, %v2187_v58  ;;  %4611 = vmatprep.mubr.msk.f32.mxu1 %vm2257_vm9, %v2232_v19  ;;  %vm2203_vm12 = vcmp.gt.f32.partialorder %v2187_v58, 0.0 }
 0x1c3   : > { %vm2202_vm13 = vcmp.gt.f32.partialorder %v2186_v51, 0.0  ;;  %v2218_v38 = vmul.f32 0.01, %v2186_v51  ;;  %v4587_v43 = vpop.f32.mrb[6].mxu0  ;;  %4612 = vmatmul.mubr.msk.f32.gmra.mrb[10].mxu1 %vm2257_vm9, %v2233_v33 }
 0x1c4   : > { %v2189_v11 = vadd.f32 %v4587_v43, %v6162_v49  ;;  %v2110_v32 = vpop.f32.mrb[7].mxu0  ;;  %4915 = vmatpush3.bf16.msra.mxu1 %v4912_v15  ;;  %v2235_v29 = vsel %vm2203_vm12, %v2187_v58, %v2219_v27 }
 0x1c5   : > { %v2188_v44 = vadd.f32 %v6162_v49, %v2110_v32  ;;  %v2234_v53 = vsel %vm2202_vm13, %v2186_v51, %v2218_v38  ;;  %4917 = vmatprep.subr.bf16.mxu1 %v4916_v24 }
 0x1c6   : > { %v2221_v47 = vmul.f32 0.01, %v2189_v11  ;;  %4614 = vmatprep.mubr.msk.f32.mxu1 %vm2257_vm9, %v2234_v53  ;;  %vm2205_vm14 = vcmp.gt.f32.partialorder %v2189_v11, 0.0 }
 0x1c7   : > { %vm2204_vm15 = vcmp.gt.f32.partialorder %v2188_v44, 0.0  ;;  %v2220_v30 = vmul.f32 0.01, %v2188_v44  ;;  %v4590_v23 = vpop.f32.mrb[8].mxu0  ;;  %4615 = vmatmul.mubr.msk.f32.gmra.mrb[12].mxu1 %vm2257_vm9, %v2235_v29 }
 0x1c8   : > { %v4952_v25 = vadd.f32 %v4590_v23, %v6143_v5  ;;  %v2120_v7 = vpop.f32.mrb[9].mxu0  ;;  %4919 = vmatpush3.bf16.msra.mxu1 %v4916_v24  ;;  %v2237_v50 = vsel %vm2205_vm14, %v2189_v11, %v2221_v47 }
 0x1c9   : > { %v4953_v26 = vadd.f32 %v2120_v7, %v6145_v34  ;;  %v2236_v37 = vsel %vm2204_vm15, %v2188_v44, %v2220_v30  ;;  %4921 = vmatprep.subr.bf16.mxu1 %v4920_v59 }
 0x1ca   : > { %v2191_v21 = vadd.f32 %v4952_v25, %v6162_v49  ;;  %4617 = vmatprep.mubr.msk.f32.mxu1 %vm2257_vm9, %v2236_v37 }
 0x1cb   : > { %v2190_v60 = vadd.f32 %v4953_v26, %v6162_v49  ;;  %v4593_v22 = vpop.f32.mrb[10].mxu0  ;;  %4618 = vmatmul.mubr.msk.f32.gmra.mrb[14].mxu1 %vm2257_vm9, %v2237_v50  ;;  %v6307_v26 = vld [vmem:[%s6579_s7] ss:$0 sm:$0xff] }
 0x1cc   : > { %v2223_v63 = vmul.f32 0.01, %v2191_v21  ;;  %v4954_v6 = vadd.f32 %v4593_v22, %v6147_v41  ;;  %v2130_v5 = vpop.f32.mrb[11].mxu0  ;;  %4923 = vmatpush3.bf16.msra.mxu1 %v4920_v59  ;;  %vm2207_vm2 = vcmp.gt.f32.partialorder %v2191_v21, 0.0 }
 0x1cd   : > { %v2222_v10 = vmul.f32 0.01, %v2190_v60  ;;  %v4955_v34 = vadd.f32 %v2130_v5, %v6149_v45  ;;  %vm2206_vm0 = vcmp.gt.f32.partialorder %v2190_v60, 0.0 }
 0x1ce   : > { %v2193_v13 = vadd.f32 %v4954_v6, %v6162_v49  ;;  %v2239_v41 = vsel %vm2207_vm2, %v2191_v21, %v2223_v63 }
 0x1cf   : > { %v2192_v15 = vadd.f32 %v4955_v34, %v6162_v49  ;;  %v4596_v17 = vpop.f32.mrb[12].mxu0  ;;  %v2238_v18 = vsel %vm2206_vm0, %v2190_v60, %v2222_v10 }
 0x1d0   : > { %v2225_v31 = vmul.f32 0.01, %v2193_v13  ;;  %v4956_v28 = vadd.f32 %v4596_v17, %v6151_v46  ;;  %v2140_v35 = vpop.f32.mrb[13].mxu0  ;;  %4620 = vmatprep.mubr.msk.f32.mxu1 %vm2257_vm9, %v2238_v18  ;;  %vm2209_vm4 = vcmp.gt.f32.partialorder %v2193_v13, 0.0 }
 0x1d1   : > { %v2224_v40 = vmul.f32 0.01, %v2192_v15  ;;  %v4957_v58 = vadd.f32 %v2140_v35, %v6153_v8  ;;  %4621 = vmatmul.mubr.msk.f32.gmra.mrb[16].mxu1 %vm2257_vm9, %v2239_v41  ;;  %vm2208_vm3 = vcmp.gt.f32.partialorder %v2192_v15, 0.0 }
 0x1d2   : > { %v2195_v45 = vadd.f32 %v4956_v28, %v6162_v49  ;;  %v2241_v33 = vsel %vm2209_vm4, %v2193_v13, %v2225_v31 }
 0x1d3   : > { %v2194_v42 = vadd.f32 %v4957_v58, %v6162_v49  ;;  %v4599_v51 = vpop.f32.mrb[14].mxu0  ;;  %v2240_v19 = vsel %vm2208_vm3, %v2192_v15, %v2224_v40 }
 0x1d4   : > { %v2227_v24 = vmul.f32 0.01, %v2195_v45  ;;  %v4958_v46 = vadd.f32 %v4599_v51, %v6155_v9  ;;  %v2150_v27 = vpop.f32.mrb[15].mxu0  ;;  %4623 = vmatprep.mubr.msk.f32.mxu1 %vm2257_vm9, %v2240_v19  ;;  %vm2211_vm6 = vcmp.gt.f32.partialorder %v2195_v45, 0.0 }
 0x1d5   : > { %v2226_v14 = vmul.f32 0.01, %v2194_v42  ;;  %v4959_v8 = vadd.f32 %v2150_v27, %v6157_v48  ;;  %4624 = vmatmul.mubr.msk.f32.gmra.mrb[18].mxu1 %vm2257_vm9, %v2241_v33  ;;  %vm2210_vm5 = vcmp.gt.f32.partialorder %v2194_v42, 0.0 }
 0x1d6   : > { %v2197_v36 = vadd.f32 %v4958_v46, %v6162_v49  ;;  %v2243_v9 = vsel %vm2211_vm6, %v2195_v45, %v2227_v24 }
 0x1d7   : > { %v2196_v38 = vadd.f32 %v4959_v8, %v6162_v49  ;;  %v2242_v43 = vsel %vm2210_vm5, %v2194_v42, %v2226_v14 }
 0x1d8   : > { %v2229_v11 = vmul.f32 0.01, %v2197_v36  ;;  %4626 = vmatprep.mubr.msk.f32.mxu1 %vm2257_vm9, %v2242_v43  ;;  %vm2213_vm8 = vcmp.gt.f32.partialorder %v2197_v36, 0.0 }
 0x1d9   : > { %v2228_v32 = vmul.f32 0.01, %v2196_v38  ;;  %4627 = vmatmul.mubr.msk.f32.gmra.mrb[20].mxu1 %vm2257_vm9, %v2243_v9  ;;  %vm2212_vm7 = vcmp.gt.f32.partialorder %v2196_v38, 0.0 }
 0x1da   : > { %v2245_v48 = vsel %vm2213_vm8, %v2197_v36, %v2229_v11 }
 0x1db   : > { %v2244_v44 = vsel %vm2212_vm7, %v2196_v38, %v2228_v32 }
 0x1dc   : > { %4629 = vmatprep.mubr.msk.f32.mxu1 %vm2257_vm9, %v2244_v44 }
 0x1dd   : > { %4630 = vmatmul.mubr.msk.f32.gmra.mrb[22].mxu1 %vm2257_vm9, %v2245_v48 }
 0x1de   : > { %4648 = vmatprep.mubr.msk.f32.mxu1 %vm640_vm1, %v5502_v52  ;;  %v2707_v52 = vld [vmem:[%s6580_s8] sm:$0xff] }
 0x1e1   : > { %4649 = vmatmul.mubr.msk.f32.vlgmr.msra.gmra.mrb[24].mxu1 %vm640_vm1, %v5508_v56  ;;  %v2708_v56 = vld [vmem:[%s6580_s8 + $0x8] sm:$0xff] }
 0x1e2   : > { %4651 = vmatprep.mubr.msk.f32.mxu1 %vm640_vm1, %v5511_v57  ;;  %v4924_v57 = vpack.c.bf16 %v2708_v56, %v2707_v52 }
 0x1e4   : > { %4925 = vmatprep.subr.bf16.mxu1 %v4924_v57 }
 0x1e5   : > { %4652 = vmatmul.mubr.msk.f32.gmra.mrb[26].mxu1 %vm640_vm1, %v5521_v61  ;;  %v2709_v61 = vld [vmem:[%s6580_s8 + $0x10] sm:$0xff] }
 0x1e6   : > { %4654 = vmatprep.mubr.msk.f32.mxu1 %vm640_vm1, %v5524_v62  ;;  %4927 = vmatpush3.bf16.msra.mxu1 %v4924_v57  ;;  %v2710_v62 = vld [vmem:[%s6580_s8 + $0x18] sm:$0xff] }
 0x1e9   : > { %4655 = vmatmul.mubr.msk.f32.gmra.mrb[28].mxu1 %vm640_vm1, %v5530_v1  ;;  %v4928_v1 = vpack.c.bf16 %v2710_v62, %v2709_v61 }
 0x1ea   : > { %4657 = vmatprep.mubr.msk.f32.mxu1 %vm640_vm1, %v5537_v3  ;;  %v2961_v3 = vld [vmem:[%s6583_s11] sm:$0xff] }
 0x1eb   : > { %4929 = vmatprep.subr.bf16.mxu1 %v4928_v1 }
 0x1ec   : > { %4931 = vmatpush3.bf16.msra.mxu1 %v4928_v1 }
 0x1ed   : > { %4658 = vmatmul.mubr.msk.f32.gmra.mrb[30].mxu1 %vm640_vm1, %v5542_v4  ;;  %v2962_v4 = vld [vmem:[%s6583_s11 + $0x8] sm:$0xff] }
 0x1ee   : > { %4660 = vmatprep.mubr.msk.f32.mxu1 %vm640_vm1, %v5925_v54  ;;  %v4932_v54 = vpack.c.bf16 %v2962_v4, %v2961_v3 }
 0x1f0   : > { %4933 = vmatprep.subr.bf16.mxu1 %v4932_v54 }
 0x1f1   : > { %4661 = vmatmul.mubr.msk.f32.gmra.mrb[32].mxu1 %vm640_vm1, %v5933_v20 }
 0x1f2   : > { %4663 = vmatprep.mubr.msk.f32.mxu1 %vm640_vm1, %v5937_v39 }
 0x1f5   : > { %4664 = vmatmul.mubr.msk.f32.gmra.mrb[34].mxu1 %vm640_vm1, %v5945_v0 }
 0x1f6   : > { %4666 = vmatprep.mubr.msk.f32.mxu1 %vm640_vm1, %v5949_v16 }
 0x1f9   : > { %4667 = vmatmul.mubr.msk.f32.gmra.mrb[36].mxu1 %vm640_vm1, %v5957_v12 }
 0x1fa   : > { %4669 = vmatprep.mubr.msk.f32.mxu1 %vm640_vm1, %v5961_v55 }
 0x1fd   : > { %4670 = vmatmul.mubr.msk.f32.gmra.mrb[38].mxu1 %vm640_vm1, %v5968_v2 }
 0x292   : > { %v6272_v20 = vpop.f32.mrb[8].mxu1 }
 0x293   : > { %v6274_v39 = vpop.f32.mrb[9].mxu1 }
 0x296   : > { %v6276_v0 = vpop.f32.mrb[10].mxu1 }
 0x297   : > { %v6278_v16 = vpop.f32.mrb[11].mxu1 }
 0x29a   : > { %v6280_v12 = vpop.f32.mrb[12].mxu1 }
 0x29b   : > { %v6282_v55 = vpop.f32.mrb[13].mxu1 }
 0x29e   : > { %v6284_v2 = vpop.f32.mrb[14].mxu1 }
 0x29f   : > { %v6286_v49 = vpop.f32.mrb[15].mxu1 }
 0x2a4   : > { %v6288_v53 = vpop.f32.mrb[16].mxu1 }
 0x2a5   : > { %v6290_v59 = vpop.f32.mrb[17].mxu1 }
 0x2a8   : > { %v6292_v47 = vpop.f32.mrb[18].mxu1 }
 0x2a9   : > { %v6294_v29 = vpop.f32.mrb[19].mxu1 }
 0x2ac   : > { %v6296_v30 = vpop.f32.mrb[20].mxu1 }
 0x2ad   : > { %v6298_v23 = vpop.f32.mrb[21].mxu1 }
 0x2b0   : > { %v6300_v25 = vpop.f32.mrb[22].mxu1 }
 0x2b1   : > { %v6302_v7 = vpop.f32.mrb[23].mxu1 }
 0x2b4   : > { %v4650_v37 = vpop.f32.mrb[24].mxu1 }
 0x2b5   : > { %v2586_v21 = vadd.f32 %v4650_v37, %v6307_v26  ;;  %v2580_v50 = vpop.f32.mrb[25].mxu1 }
 0x2b6   : > { %v2581_v60 = vadd.f32 %v6307_v26, %v2580_v50 }
 0x2b7   : > { %v2676_v22 = vmul.f32 0.01, %v2586_v21  ;;  %vm2660_vm1 = vcmp.gt.f32.partialorder %v2586_v21, 0.0 }
 0x2b8   : > { %vm2659_vm10 = vcmp.gt.f32.partialorder %v2581_v60, 0.0  ;;  %v2675_v63 = vmul.f32 0.01, %v2581_v60  ;;  %v4653_v6 = vpop.f32.mrb[26].mxu1 }
 0x2b9   : > { %v2596_v5 = vadd.f32 %v4653_v6, %v6307_v26  ;;  %v2590_v10 = vpop.f32.mrb[27].mxu1  ;;  %v2692_v15 = vsel %vm2660_vm1, %v2586_v21, %v2676_v22 }
 0x2ba   : > { %v2591_v34 = vadd.f32 %v6307_v26, %v2590_v10  ;;  %v2691_v13 = vsel %vm2659_vm10, %v2581_v60, %v2675_v63 }
 0x2bb   : > { %v2678_v17 = vmul.f32 0.01, %v2596_v5  ;;  %4680 = vmatprep.mubr.msk.f32.mxu1 %vm2257_vm9, %v2691_v13  ;;  %vm2662_vm11 = vcmp.gt.f32.partialorder %v2596_v5, 0.0 }
 0x2bc   : > { %vm2661_vm12 = vcmp.gt.f32.partialorder %v2591_v34, 0.0  ;;  %v2677_v18 = vmul.f32 0.01, %v2591_v34  ;;  %v4656_v31 = vpop.f32.mrb[28].mxu1  ;;  %4681 = vmatmul.mubr.msk.f32.vlgmr.msra.gmra.mrb[40].mxu1 %vm2257_vm9, %v2692_v15 }
 0x2bd   : > { %v2606_v28 = vadd.f32 %v4656_v31, %v6307_v26  ;;  %v2600_v35 = vpop.f32.mrb[29].mxu1  ;;  %4935 = vmatpush3.bf16.msra.mxu1 %v4932_v54  ;;  %v2694_v45 = vsel %vm2662_vm11, %v2596_v5, %v2678_v17  ;;  %vm2963_vm11 = vcmask 130048  }
 0x2be   : > { %v2601_v41 = vadd.f32 %v6307_v26, %v2600_v35  ;;  %v2693_v40 = vsel %vm2661_vm12, %v2591_v34, %v2677_v18 }
 0x2bf   : > { %v2680_v58 = vmul.f32 0.01, %v2606_v28  ;;  %4683 = vmatprep.mubr.msk.f32.mxu1 %vm2257_vm9, %v2693_v40  ;;  %vm2664_vm13 = vcmp.gt.f32.partialorder %v2606_v28, 0.0 }
 0x2c0   : > { %vm2663_vm14 = vcmp.gt.f32.partialorder %v2601_v41, 0.0  ;;  %v2679_v42 = vmul.f32 0.01, %v2601_v41  ;;  %v4659_v51 = vpop.f32.mrb[30].mxu1  ;;  %4684 = vmatmul.mubr.msk.f32.gmra.mrb[42].mxu1 %vm2257_vm9, %v2694_v45 }
 0x2c1   : > { %v2616_v19 = vadd.f32 %v4659_v51, %v6307_v26  ;;  %v2610_v24 = vpop.f32.mrb[31].mxu1  ;;  %v2696_v14 = vsel %vm2664_vm13, %v2606_v28, %v2680_v58  ;;  %v6350_v58 = vld [vmem:[%s6581_s9] ss:$0 sm:$0xff] }
 0x2c2   : > { %v2611_v46 = vadd.f32 %v6307_v26, %v2610_v24  ;;  %v2695_v27 = vsel %vm2663_vm14, %v2601_v41, %v2679_v42  ;;  %v2960_v41 = vld [vmem:[%s6582_s10 + $0x8] sm:$0xff] }
 0x2c3   : > { %v2682_v33 = vmul.f32 0.01, %v2616_v19  ;;  %4686 = vmatprep.mubr.msk.f32.mxu1 %vm2257_vm9, %v2695_v27  ;;  %vm2666_vm15 = vcmp.gt.f32.partialorder %v2616_v19, 0.0  ;;  %v3422_v27 = vld [vmem:[%s6585_s13 + $0x8] sm:$0xff] }
 0x2c4   : > { %vm2665_vm0 = vcmp.gt.f32.partialorder %v2611_v46, 0.0  ;;  %v2681_v8 = vmul.f32 0.01, %v2611_v46  ;;  %v4662_v36 = vpop.f32.mrb[32].mxu1  ;;  %4687 = vmatmul.mubr.msk.f32.gmra.mrb[44].mxu1 %vm2257_vm9, %v2696_v14 }
 0x2c5   : > { %v2626_v38 = vadd.f32 %v4662_v36, %v6307_v26  ;;  %v2620_v43 = vpop.f32.mrb[33].mxu1  ;;  %v2698_v44 = vsel %vm2666_vm15, %v2616_v19, %v2682_v33 }
 0x2c6   : > { %v2621_v11 = vadd.f32 %v6307_v26, %v2620_v43  ;;  %v2697_v9 = vsel %vm2665_vm0, %v2611_v46, %v2681_v8  ;;  %v3421_v46 = vld [vmem:[%s6585_s13] sm:$0xff] }
 0x2c7   : > { %v2684_v32 = vmul.f32 0.01, %v2626_v38  ;;  %4689 = vmatprep.mubr.msk.f32.mxu1 %vm2257_vm9, %v2697_v9  ;;  %vm2668_vm2 = vcmp.gt.f32.partialorder %v2626_v38, 0.0 }
 0x2c8   : > { %vm2667_vm3 = vcmp.gt.f32.partialorder %v2621_v11, 0.0  ;;  %v2683_v48 = vmul.f32 0.01, %v2621_v11  ;;  %v4665_v52 = vpop.f32.mrb[34].mxu1  ;;  %4690 = vmatmul.mubr.msk.f32.gmra.mrb[46].mxu1 %vm2257_vm9, %v2698_v44 }
 0x2c9   : > { %v2636_v56 = vadd.f32 %v4665_v52, %v6307_v26  ;;  %v2630_v57 = vpop.f32.mrb[35].mxu1  ;;  %v2700_v3 = vsel %vm2668_vm2, %v2626_v38, %v2684_v32 }
 0x2ca   : > { %v2631_v61 = vadd.f32 %v6307_v26, %v2630_v57  ;;  %v2699_v62 = vsel %vm2667_vm3, %v2621_v11, %v2683_v48  ;;  %v6362_v11 = vpack.c.bf16 %v3422_v27, %v3421_v46 }
 0x2cb   : > { %v2686_v1 = vmul.f32 0.01, %v2636_v56  ;;  %4692 = vmatprep.mubr.msk.f32.mxu1 %vm2257_vm9, %v2699_v62  ;;  %vm2670_vm4 = vcmp.gt.f32.partialorder %v2636_v56, 0.0 }
 0x2cc   : > { %vm2669_vm5 = vcmp.gt.f32.partialorder %v2631_v61, 0.0  ;;  %v2685_v4 = vmul.f32 0.01, %v2631_v61  ;;  %v4668_v54 = vpop.f32.mrb[36].mxu1  ;;  %4693 = vmatmul.mubr.msk.f32.gmra.mrb[48].mxu1 %vm2257_vm9, %v2700_v3 }
 0x2cd   : > { %v2646_v37 = vadd.f32 %v4668_v54, %v6307_v26  ;;  %v2640_v21 = vpop.f32.mrb[37].mxu1  ;;  %v2702_v63 = vsel %vm2670_vm4, %v2636_v56, %v2686_v1 }
 0x2ce   : > { %v2641_v50 = vadd.f32 %v6307_v26, %v2640_v21  ;;  %v2701_v60 = vsel %vm2669_vm5, %v2631_v61, %v2685_v4 }
 0x2cf   : > { %v2688_v22 = vmul.f32 0.01, %v2646_v37  ;;  %4695 = vmatprep.mubr.msk.f32.mxu1 %vm2257_vm9, %v2701_v60  ;;  %vm2672_vm6 = vcmp.gt.f32.partialorder %v2646_v37, 0.0 }
 0x2d0   : > { %vm2671_vm7 = vcmp.gt.f32.partialorder %v2641_v50, 0.0  ;;  %v2687_v6 = vmul.f32 0.01, %v2641_v50  ;;  %v4671_v5 = vpop.f32.mrb[38].mxu1  ;;  %4696 = vmatmul.mubr.msk.f32.gmra.mrb[50].mxu1 %vm2257_vm9, %v2702_v63 }
 0x2d1   : > { %v2656_v10 = vadd.f32 %v4671_v5, %v6307_v26  ;;  %v2650_v34 = vpop.f32.mrb[39].mxu1  ;;  %v2704_v18 = vsel %vm2672_vm6, %v2646_v37, %v2688_v22 }
 0x2d2   : > { %v2651_v13 = vadd.f32 %v6307_v26, %v2650_v34  ;;  %v2703_v15 = vsel %vm2671_vm7, %v2641_v50, %v2687_v6  ;;  %v2959_v26 = vld [vmem:[%s6582_s10] sm:$0xff] }
 0x2d3   : > { %v2690_v17 = vmul.f32 0.01, %v2656_v10  ;;  %4698 = vmatprep.mubr.msk.f32.mxu1 %vm2257_vm9, %v2703_v15  ;;  %vm2674_vm8 = vcmp.gt.f32.partialorder %v2656_v10, 0.0  ;;  %v4936_v40 = vpack.c.bf16 %v2960_v41, %v2959_v26 }
 0x2d4   : > { %vm2673_vm1 = vcmp.gt.f32.partialorder %v2651_v13, 0.0  ;;  %v2689_v31 = vmul.f32 0.01, %v2651_v13  ;;  %4699 = vmatmul.mubr.msk.f32.gmra.mrb[52].mxu1 %vm2257_vm9, %v2704_v18 }
 0x2d5   : > { %v2706_v35 = vsel %vm2674_vm8, %v2656_v10, %v2690_v17  ;;  %4937 = vmatprep.subr.bf16.mxu1 %v4936_v40 }
 0x2d6   : > { %v2705_v28 = vsel %vm2673_vm1, %v2651_v13, %v2689_v31 }
 0x2d7   : > { %4701 = vmatprep.mubr.msk.f32.mxu1 %vm2257_vm9, %v2705_v28 }
 0x2d8   : > { %4702 = vmatmul.mubr.msk.f32.gmra.mrb[54].mxu1 %vm2257_vm9, %v2706_v35 }
 0x38f   : > { %v4682_v45 = vpop.f32.mrb[40].mxu1 }
 0x390   : > { %v2838_v42 = vadd.f32 %v4682_v45, %v6350_v58  ;;  %v2832_v51 = vpop.f32.mrb[41].mxu1 }
 0x391   : > { %v2833_v19 = vadd.f32 %v6350_v58, %v2832_v51 }
 0x392   : > { %v2928_v24 = vmul.f32 0.01, %v2838_v42  ;;  %vm2912_vm9 = vcmp.gt.f32.partialorder %v2838_v42, 0.0 }
 0x393   : > { %vm2911_vm10 = vcmp.gt.f32.partialorder %v2833_v19, 0.0  ;;  %v2927_v33 = vmul.f32 0.01, %v2833_v19  ;;  %v4685_v14 = vpop.f32.mrb[42].mxu1 }
 0x394   : > { %v2848_v8 = vadd.f32 %v4685_v14, %v6350_v58  ;;  %v2842_v36 = vpop.f32.mrb[43].mxu1  ;;  %v2944_v9 = vsel %vm2912_vm9, %v2838_v42, %v2928_v24 }
 0x395   : > { %v2843_v38 = vadd.f32 %v6350_v58, %v2842_v36  ;;  %v2943_v43 = vsel %vm2911_vm10, %v2833_v19, %v2927_v33 }
 0x396   : > { %v2930_v32 = vmul.f32 0.01, %v2848_v8  ;;  %4708 = vmatprep.mubr.msk.f32.mxu1 %vm2963_vm11, %v2943_v43  ;;  %vm2914_vm12 = vcmp.gt.f32.partialorder %v2848_v8, 0.0 }
 0x397   : > { %vm2913_vm13 = vcmp.gt.f32.partialorder %v2843_v38, 0.0  ;;  %v2929_v44 = vmul.f32 0.01, %v2843_v38  ;;  %v4688_v48 = vpop.f32.mrb[44].mxu1  ;;  %4709 = vmatmul.mubr.msk.f32.vlgmr.msra.gmra.mrb[56].mxu1 %vm2963_vm11, %v2944_v9 }
 0x398   : > { %v2858_v52 = vadd.f32 %v4688_v48, %v6350_v58  ;;  %v2852_v56 = vpop.f32.mrb[45].mxu1  ;;  %4939 = vmatpush3.bf16.msra.mxu1 %v4936_v40  ;;  %v2946_v1 = vsel %vm2914_vm12, %v2848_v8, %v2930_v32  ;;  %v6384_v40 = vld [vmem:[%s6577_s5] ss:$0 sm:$0xff] }
 0x399   : > { %v2853_v57 = vadd.f32 %v6350_v58, %v2852_v56  ;;  %v2945_v61 = vsel %vm2913_vm13, %v2843_v38, %v2929_v44  ;;  %4941 = vmatprep.subr.bf16.mxu1 %v6362_v11  ;;  %v2373_v14 = vadd.f32 %v6384_v40, %v6274_v39 }
 0x39a   : > { %v2932_v62 = vmul.f32 0.01, %v2858_v52  ;;  %4711 = vmatprep.mubr.msk.f32.mxu1 %vm2963_vm11, %v2945_v61  ;;  %vm2916_vm14 = vcmp.gt.f32.partialorder %v2858_v52, 0.0  ;;  %v2383_v61 = vadd.f32 %v6384_v40, %v6278_v16 }
 0x39b   : > { %vm2915_vm15 = vcmp.gt.f32.partialorder %v2853_v57, 0.0  ;;  %v2931_v3 = vmul.f32 0.01, %v2853_v57  ;;  %v4691_v4 = vpop.f32.mrb[46].mxu1  ;;  %4712 = vmatmul.mubr.msk.f32.gmra.mrb[58].mxu1 %vm2963_vm11, %v2946_v1  ;;  %v2467_v39 = vmul.f32 0.01, %v2373_v14 }
 0x39c   : > { %v2868_v54 = vadd.f32 %v4691_v4, %v6350_v58  ;;  %v2862_v37 = vpop.f32.mrb[47].mxu1  ;;  %v2948_v22 = vsel %vm2916_vm14, %v2858_v52, %v2932_v62  ;;  %v2378_v52 = vadd.f32 %v6272_v20, %v6384_v40  ;;  %vm2451_vm10 = vcmp.gt.f32.partialorder %v2373_v14, 0.0 }
 0x39d   : > { %v2863_v21 = vadd.f32 %v6350_v58, %v2862_v37  ;;  %v2947_v50 = vsel %vm2915_vm15, %v2853_v57, %v2931_v3  ;;  %v2388_v3 = vadd.f32 %v6276_v0, %v6384_v40  ;;  %v2469_v4 = vmul.f32 0.01, %v2383_v61 }
 0x39e   : > { %v2934_v60 = vmul.f32 0.01, %v2868_v54  ;;  %4714 = vmatprep.mubr.msk.f32.mxu1 %vm2963_vm11, %v2947_v50  ;;  %vm2918_vm0 = vcmp.gt.f32.partialorder %v2868_v54, 0.0  ;;  %vm2452_vm12 = vcmp.gt.f32.partialorder %v2378_v52, 0.0  ;;  %v2483_v16 = vsel %vm2451_vm10, %v2373_v14, %v2467_v39 }
 0x39f   : > { %vm2917_vm2 = vcmp.gt.f32.partialorder %v2863_v21, 0.0  ;;  %v2933_v63 = vmul.f32 0.01, %v2863_v21  ;;  %v4694_v6 = vpop.f32.mrb[48].mxu1  ;;  %4715 = vmatmul.mubr.msk.f32.gmra.mrb[60].mxu1 %vm2963_vm11, %v2948_v22  ;;  %vm2453_vm13 = vcmp.gt.f32.partialorder %v2383_v61, 0.0  ;;  %v2398_v50 = vadd.f32 %v6280_v12, %v6384_v40 }
 0x3a0   : > { %v2878_v5 = vadd.f32 %v4694_v6, %v6350_v58  ;;  %v2872_v10 = vpop.f32.mrb[49].mxu1  ;;  %v2950_v17 = vsel %vm2918_vm0, %v2868_v54, %v2934_v60  ;;  %v2393_v54 = vadd.f32 %v6384_v40, %v6282_v55  ;;  %vm2454_vm14 = vcmp.gt.f32.partialorder %v2388_v3, 0.0 }
 0x3a1   : > { %v2873_v34 = vadd.f32 %v6350_v58, %v2872_v10  ;;  %v2949_v13 = vsel %vm2917_vm2, %v2863_v21, %v2933_v63  ;;  %v2470_v21 = vmul.f32 0.01, %v2388_v3  ;;  %v2403_v60 = vadd.f32 %v6384_v40, %v6286_v49 }
 0x3a2   : > { %v2936_v15 = vmul.f32 0.01, %v2878_v5  ;;  %4717 = vmatprep.mubr.msk.f32.mxu1 %vm2963_vm11, %v2949_v13  ;;  %vm2920_vm3 = vcmp.gt.f32.partialorder %v2878_v5, 0.0  ;;  %v2471_v0 = vmul.f32 0.01, %v2393_v54  ;;  %v2485_v22 = vsel %vm2453_vm13, %v2383_v61, %v2469_v4 }
 0x3a3   : > { %vm2919_vm4 = vcmp.gt.f32.partialorder %v2873_v34, 0.0  ;;  %v2935_v18 = vmul.f32 0.01, %v2873_v34  ;;  %v4697_v31 = vpop.f32.mrb[50].mxu1  ;;  %4718 = vmatmul.mubr.msk.f32.gmra.mrb[62].mxu1 %vm2963_vm11, %v2950_v17  ;;  %vm2455_vm15 = vcmp.gt.f32.partialorder %v2393_v54, 0.0  ;;  %v2408_v63 = vadd.f32 %v6284_v2, %v6384_v40 }
 0x3a4   : > { %v2888_v28 = vadd.f32 %v4697_v31, %v6350_v58  ;;  %v2882_v35 = vpop.f32.mrb[51].mxu1  ;;  %v2952_v42 = vsel %vm2920_vm3, %v2878_v5, %v2936_v15  ;;  %v2472_v55 = vmul.f32 0.01, %v2398_v50  ;;  %v2486_v6 = vsel %vm2454_vm14, %v2388_v3, %v2470_v21 }
 0x3a5   : > { %v2883_v26 = vadd.f32 %v6350_v58, %v2882_v35  ;;  %v2951_v41 = vsel %vm2919_vm4, %v2873_v34, %v2935_v18  ;;  %vm2456_vm0 = vcmp.gt.f32.partialorder %v2398_v50, 0.0  ;;  %v2473_v12 = vmul.f32 0.01, %v2403_v60 }
 0x3a6   : > { %v2938_v45 = vmul.f32 0.01, %v2888_v28  ;;  %4720 = vmatprep.mubr.msk.f32.mxu1 %vm2963_vm11, %v2951_v41  ;;  %vm2922_vm5 = vcmp.gt.f32.partialorder %v2888_v28, 0.0  ;;  %v2413_v5 = vadd.f32 %v6384_v40, %v6290_v59  ;;  %v2487_v49 = vsel %vm2455_vm15, %v2393_v54, %v2471_v0 }
 0x3a7   : > { %vm2921_vm6 = vcmp.gt.f32.partialorder %v2883_v26, 0.0  ;;  %v2937_v51 = vmul.f32 0.01, %v2883_v26  ;;  %v4700_v19 = vpop.f32.mrb[52].mxu1  ;;  %4721 = vmatmul.mubr.msk.f32.gmra.mrb[64].mxu1 %vm2963_vm11, %v2952_v42  ;;  %vm2457_vm2 = vcmp.gt.f32.partialorder %v2403_v60, 0.0  ;;  %v2488_v34 = vsel %vm2456_vm0, %v2398_v50, %v2472_v55 }
 0x3a8   : > { %v2898_v24 = vadd.f32 %v4700_v19, %v6350_v58  ;;  %v2892_v46 = vpop.f32.mrb[53].mxu1  ;;  %v2954_v36 = vsel %vm2922_vm5, %v2888_v28, %v2938_v45  ;;  %v2474_v10 = vmul.f32 0.01, %v2408_v63  ;;  %vm2458_vm3 = vcmp.gt.f32.partialorder %v2408_v63, 0.0 }
 0x3a9   : > { %v2893_v27 = vadd.f32 %v6350_v58, %v2892_v46  ;;  %v2953_v33 = vsel %vm2921_vm6, %v2883_v26, %v2937_v51  ;;  %v2475_v13 = vmul.f32 0.01, %v2413_v5  ;;  %v2423_v2 = vadd.f32 %v6384_v40, %v6294_v29 }
 0x3aa   : > { %v2940_v8 = vmul.f32 0.01, %v2898_v24  ;;  %4723 = vmatprep.mubr.msk.f32.mxu1 %vm2963_vm11, %v2953_v33  ;;  %vm2924_vm7 = vcmp.gt.f32.partialorder %v2898_v24, 0.0  ;;  %v2489_v15 = vsel %vm2457_vm2, %v2403_v60, %v2473_v12  ;;  %vm2459_vm4 = vcmp.gt.f32.partialorder %v2413_v5, 0.0 }
 0x3ab   : > { %vm2923_vm8 = vcmp.gt.f32.partialorder %v2893_v27, 0.0  ;;  %v2939_v38 = vmul.f32 0.01, %v2893_v27  ;;  %v4703_v43 = vpop.f32.mrb[54].mxu1  ;;  %4724 = vmatmul.mubr.msk.f32.gmra.mrb[66].mxu1 %vm2963_vm11, %v2954_v36  ;;  %v2428_v17 = vadd.f32 %v6292_v47, %v6384_v40  ;;  %v2490_v18 = vsel %vm2458_vm3, %v2408_v63, %v2474_v10 }
 0x3ac   : > { %v2908_v9 = vadd.f32 %v4703_v43, %v6350_v58  ;;  %v2902_v32 = vpop.f32.mrb[55].mxu1  ;;  %v2956_v57 = vsel %vm2924_vm7, %v2898_v24, %v2940_v8  ;;  %v2477_v31 = vmul.f32 0.01, %v2423_v2  ;;  %v2491_v28 = vsel %vm2459_vm4, %v2413_v5, %v2475_v13 }
 0x3ad   : > { %v2903_v44 = vadd.f32 %v6350_v58, %v2902_v32  ;;  %v2955_v48 = vsel %vm2923_vm8, %v2893_v27, %v2939_v38  ;;  %v2468_v58 = vmul.f32 0.01, %v2378_v52  ;;  %vm2461_vm6 = vcmp.gt.f32.partialorder %v2423_v2, 0.0 }
 0x3ae   : > { %v2942_v56 = vmul.f32 0.01, %v2908_v9  ;;  %4726 = vmatprep.mubr.msk.f32.mxu1 %vm2963_vm11, %v2955_v48  ;;  %vm2926_vm1 = vcmp.gt.f32.partialorder %v2908_v9, 0.0  ;;  %v2478_v29 = vmul.f32 0.01, %v2428_v17  ;;  %v2438_v35 = vadd.f32 %v6296_v30, %v6384_v40 }
 0x3af   : > { %vm2925_vm9 = vcmp.gt.f32.partialorder %v2903_v44, 0.0  ;;  %v2941_v62 = vmul.f32 0.01, %v2903_v44  ;;  %4727 = vmatmul.mubr.msk.f32.gmra.mrb[68].mxu1 %vm2963_vm11, %v2956_v57  ;;  %v2484_v37 = vsel %vm2452_vm12, %v2378_v52, %v2468_v58  ;;  %vm2462_vm7 = vcmp.gt.f32.partialorder %v2428_v17, 0.0 }
 0x3b0   : > { %v2958_v20 = vsel %vm2926_vm1, %v2908_v9, %v2942_v56  ;;  %v2443_v47 = vadd.f32 %v6384_v40, %v6302_v7  ;;  %v2493_v45 = vsel %vm2461_vm6, %v2423_v2, %v2477_v31  ;;  %v2448_v42 = vadd.f32 %v6300_v25, %v6384_v40  ;;  %v6450_v25 = vld [vmem:[%s6584_s12] ss:$0 sm:$0xff] }
 0x3b1   : > { %v2957_v1 = vsel %vm2925_vm9, %v2903_v44, %v2941_v62  ;;  %v2494_v51 = vsel %vm2462_vm7, %v2428_v17, %v2478_v29  ;;  %vm2464_vm1 = vcmp.gt.f32.partialorder %v2438_v35, 0.0 }
 0x3b2   : > { %4729 = vmatprep.mubr.msk.f32.mxu1 %vm2963_vm11, %v2957_v1  ;;  %v2481_v19 = vmul.f32 0.01, %v2443_v47  ;;  %vm2465_vm9 = vcmp.gt.f32.partialorder %v2443_v47, 0.0  ;;  %v2482_v7 = vmul.f32 0.01, %v2448_v42  ;;  %vm2466_vm10 = vcmp.gt.f32.partialorder %v2448_v42, 0.0 }
 0x3b3   : > { %4730 = vmatmul.mubr.msk.f32.gmra.mrb[70].mxu1 %vm2963_vm11, %v2958_v20 }
 0x3b4   : > { %4736 = vmatprep.mubr.msk.f32.mxu1 %vm2963_vm11, %v2483_v16  ;;  %v2497_v46 = vsel %vm2465_vm9, %v2443_v47, %v2481_v19  ;;  %v2498_v27 = vsel %vm2466_vm10, %v2448_v42, %v2482_v7 }
 0x3b7   : > { %4737 = vmatmul.mubr.msk.f32.vlgmr.msra.gmra.mrb[56].mxu1 %vm2963_vm11, %v2484_v37 }
 0x3b8   : > { %4739 = vmatprep.mubr.msk.f32.mxu1 %vm2963_vm11, %v2485_v22  ;;  %4943 = vmatpush3.bf16.msra.mxu1 %v6362_v11  ;;  %v2418_v11 = vadd.f32 %v6288_v53, %v6384_v40  ;;  %v2433_v53 = vadd.f32 %v6384_v40, %v6298_v23  ;;  %v2480_v23 = vmul.f32 0.01, %v2438_v35 }
 0x3ba   : > { %v2476_v59 = vmul.f32 0.01, %v2418_v11  ;;  %vm2460_vm5 = vcmp.gt.f32.partialorder %v2418_v11, 0.0  ;;  %v2479_v41 = vmul.f32 0.01, %v2433_v53  ;;  %vm2463_vm8 = vcmp.gt.f32.partialorder %v2433_v53, 0.0 }
 0x3bb   : > { %4740 = vmatmul.mubr.msk.f32.gmra.mrb[58].mxu1 %vm2963_vm11, %v2486_v6  ;;  %v2496_v24 = vsel %vm2464_vm1, %v2438_v35, %v2480_v23 }
 0x3bc   : > { %4742 = vmatprep.mubr.msk.f32.mxu1 %vm2963_vm11, %v2487_v49  ;;  %v2492_v26 = vsel %vm2460_vm5, %v2418_v11, %v2476_v59  ;;  %v2495_v30 = vsel %vm2463_vm8, %v2433_v53, %v2479_v41 }
 0x3bf   : > { %4743 = vmatmul.mubr.msk.f32.gmra.mrb[60].mxu1 %vm2963_vm11, %v2488_v34 }
 0x3c0   : > { %4745 = vmatprep.mubr.msk.f32.mxu1 %vm2963_vm11, %v2489_v15 }
 0x3c3   : > { %4746 = vmatmul.mubr.msk.f32.gmra.mrb[62].mxu1 %vm2963_vm11, %v2490_v18 }
 0x3c4   : > { %4748 = vmatprep.mubr.msk.f32.mxu1 %vm2963_vm11, %v2491_v28 }
 0x3c7   : > { %4749 = vmatmul.mubr.msk.f32.gmra.mrb[64].mxu1 %vm2963_vm11, %v2492_v26 }
 0x3c8   : > { %4751 = vmatprep.mubr.msk.f32.mxu1 %vm2963_vm11, %v2493_v45 }
 0x3cb   : > { %4752 = vmatmul.mubr.msk.f32.gmra.mrb[66].mxu1 %vm2963_vm11, %v2494_v51 }
 0x3cc   : > { %4754 = vmatprep.mubr.msk.f32.mxu1 %vm2963_vm11, %v2495_v30 }
 0x3cf   : > { %4755 = vmatmul.mubr.msk.f32.gmra.mrb[68].mxu1 %vm2963_vm11, %v2496_v24 }
 0x3d0   : > { %4757 = vmatprep.mubr.msk.f32.mxu1 %vm2963_vm11, %v2497_v46 }
 0x3d3   : > { %4758 = vmatmul.mubr.msk.f32.gmra.mrb[70].mxu1 %vm2963_vm11, %v2498_v27 }
 0x48a   : > { %v4738_v40 = vpop.f32.mrb[56].mxu1 }
 0x48b   : > { %v3358_v33 = vadd.f32 %v4738_v40, %v6450_v25  ;;  %v3271_v14 = vpop.f32.mrb[57].mxu1 }
 0x48c   : > { %v3357_v8 = vadd.f32 %v6450_v25, %v3271_v14 }
 0x48d   : > { %v3390_v36 = vmul.f32 0.01, %v3358_v33  ;;  %vm3374_vm12 = vcmp.gt.f32.partialorder %v3358_v33, 0.0 }
 0x48e   : > { %vm3373_vm13 = vcmp.gt.f32.partialorder %v3357_v8, 0.0  ;;  %v3389_v38 = vmul.f32 0.01, %v3357_v8  ;;  %v4741_v43 = vpop.f32.mrb[58].mxu1 }
 0x48f   : > { %v3360_v9 = vadd.f32 %v4741_v43, %v6450_v25  ;;  %v3281_v32 = vpop.f32.mrb[59].mxu1  ;;  %v3406_v52 = vsel %vm3374_vm12, %v3358_v33, %v3390_v36 }
 0x490   : > { %v3359_v44 = vadd.f32 %v6450_v25, %v3281_v32  ;;  %v3405_v48 = vsel %vm3373_vm13, %v3357_v8, %v3389_v38 }
 0x491   : > { %v3392_v39 = vmul.f32 0.01, %v3360_v9  ;;  %4764 = vmatprep.mubr.msk.f32.mxu1 %vm2963_vm11, %v3405_v48  ;;  %vm3376_vm14 = vcmp.gt.f32.partialorder %v3360_v9, 0.0 }
 0x492   : > { %vm3375_vm15 = vcmp.gt.f32.partialorder %v3359_v44, 0.0  ;;  %v3391_v56 = vmul.f32 0.01, %v3359_v44  ;;  %v4744_v57 = vpop.f32.mrb[60].mxu1  ;;  %4765 = vmatmul.mubr.msk.f32.vlgmr.msra.gmra.mrb[72].mxu1 %vm2963_vm11, %v3406_v52 }
 0x493   : > { %v3362_v61 = vadd.f32 %v4744_v57, %v6450_v25  ;;  %v3291_v62 = vpop.f32.mrb[61].mxu1  ;;  %v3408_v20 = vsel %vm3376_vm14, %v3360_v9, %v3392_v39 }
 0x494   : > { %v3361_v1 = vadd.f32 %v6450_v25, %v3291_v62  ;;  %v3407_v58 = vsel %vm3375_vm15, %v3359_v44, %v3391_v56 }
 0x495   : > { %v3394_v3 = vmul.f32 0.01, %v3362_v61  ;;  %4767 = vmatprep.mubr.msk.f32.mxu1 %vm2963_vm11, %v3407_v58  ;;  %vm3378_vm0 = vcmp.gt.f32.partialorder %v3362_v61, 0.0 }
 0x496   : > { %vm3377_vm2 = vcmp.gt.f32.partialorder %v3361_v1, 0.0  ;;  %v3393_v4 = vmul.f32 0.01, %v3361_v1  ;;  %v4747_v54 = vpop.f32.mrb[62].mxu1  ;;  %4768 = vmatmul.mubr.msk.f32.gmra.mrb[74].mxu1 %vm2963_vm11, %v3408_v20 }
 0x497   : > { %v3364_v16 = vadd.f32 %v4747_v54, %v6450_v25  ;;  %v3301_v37 = vpop.f32.mrb[63].mxu1  ;;  %v3410_v60 = vsel %vm3378_vm0, %v3362_v61, %v3394_v3 }
 0x498   : > { %v3363_v21 = vadd.f32 %v6450_v25, %v3301_v37  ;;  %v3409_v50 = vsel %vm3377_vm2, %v3361_v1, %v3393_v4 }
 0x499   : > { %v3396_v0 = vmul.f32 0.01, %v3364_v16  ;;  %4770 = vmatprep.mubr.msk.f32.mxu1 %vm2963_vm11, %v3409_v50  ;;  %vm3380_vm3 = vcmp.gt.f32.partialorder %v3364_v16, 0.0 }
 0x49a   : > { %vm3379_vm4 = vcmp.gt.f32.partialorder %v3363_v21, 0.0  ;;  %v3395_v22 = vmul.f32 0.01, %v3363_v21  ;;  %v4750_v55 = vpop.f32.mrb[64].mxu1  ;;  %4771 = vmatmul.mubr.msk.f32.gmra.mrb[76].mxu1 %vm2963_vm11, %v3410_v60 }
 0x49b   : > { %v3366_v63 = vadd.f32 %v4750_v55, %v6450_v25  ;;  %v3311_v6 = vpop.f32.mrb[65].mxu1  ;;  %v3412_v10 = vsel %vm3380_vm3, %v3364_v16, %v3396_v0 }
 0x49c   : > { %v3365_v12 = vadd.f32 %v6450_v25, %v3311_v6  ;;  %v3411_v5 = vsel %vm3379_vm4, %v3363_v21, %v3395_v22 }
 0x49d   : > { %v3398_v49 = vmul.f32 0.01, %v3366_v63  ;;  %4773 = vmatprep.mubr.msk.f32.mxu1 %vm2963_vm11, %v3411_v5  ;;  %vm3382_vm5 = vcmp.gt.f32.partialorder %v3366_v63, 0.0 }
 0x49e   : > { %vm3381_vm6 = vcmp.gt.f32.partialorder %v3365_v12, 0.0  ;;  %v3397_v11 = vmul.f32 0.01, %v3365_v12  ;;  %v4753_v34 = vpop.f32.mrb[66].mxu1  ;;  %4774 = vmatmul.mubr.msk.f32.gmra.mrb[78].mxu1 %vm2963_vm11, %v3412_v10 }
 0x49f   : > { %v3368_v13 = vadd.f32 %v4753_v34, %v6450_v25  ;;  %v3321_v2 = vpop.f32.mrb[67].mxu1  ;;  %v3414_v18 = vsel %vm3382_vm5, %v3366_v63, %v3398_v49 }
 0x4a0   : > { %v3367_v15 = vadd.f32 %v6450_v25, %v3321_v2  ;;  %v3413_v59 = vsel %vm3381_vm6, %v3365_v12, %v3397_v11 }
 0x4a1   : > { %v3400_v17 = vmul.f32 0.01, %v3368_v13  ;;  %4776 = vmatprep.mubr.msk.f32.mxu1 %vm2963_vm11, %v3413_v59  ;;  %vm3384_vm7 = vcmp.gt.f32.partialorder %v3368_v13, 0.0 }
 0x4a2   : > { %vm3383_vm8 = vcmp.gt.f32.partialorder %v3367_v15, 0.0  ;;  %v3399_v31 = vmul.f32 0.01, %v3367_v15  ;;  %v4756_v53 = vpop.f32.mrb[68].mxu1  ;;  %4777 = vmatmul.mubr.msk.f32.gmra.mrb[80].mxu1 %vm2963_vm11, %v3414_v18 }
 0x4a3   : > { %v3370_v28 = vadd.f32 %v4756_v53, %v6450_v25  ;;  %v3331_v29 = vpop.f32.mrb[69].mxu1  ;;  %v3416_v47 = vsel %vm3384_vm7, %v3368_v13, %v3400_v17 }
 0x4a4   : > { %v3369_v35 = vadd.f32 %v6450_v25, %v3331_v29  ;;  %v3415_v26 = vsel %vm3383_vm8, %v3367_v15, %v3399_v31 }
 0x4a5   : > { %v3402_v41 = vmul.f32 0.01, %v3370_v28  ;;  %4779 = vmatprep.mubr.msk.f32.mxu1 %vm2963_vm11, %v3415_v26  ;;  %vm3386_vm1 = vcmp.gt.f32.partialorder %v3370_v28, 0.0 }
 0x4a6   : > { %vm3385_vm9 = vcmp.gt.f32.partialorder %v3369_v35, 0.0  ;;  %v3401_v45 = vmul.f32 0.01, %v3369_v35  ;;  %v4759_v23 = vpop.f32.mrb[70].mxu1  ;;  %4780 = vmatmul.mubr.msk.f32.gmra.mrb[82].mxu1 %vm2963_vm11, %v3416_v47 }
 0x4a7   : > { %v3372_v42 = vadd.f32 %v4759_v23, %v6450_v25  ;;  %v3341_v51 = vpop.f32.mrb[71].mxu1  ;;  %v3418_v24 = vsel %vm3386_vm1, %v3370_v28, %v3402_v41 }
 0x4a8   : > { %v3371_v19 = vadd.f32 %v6450_v25, %v3341_v51  ;;  %v3417_v30 = vsel %vm3385_vm9, %v3369_v35, %v3401_v45  ;;  %v4011_v25 = vld [vmem:[%s6621_s17] ss:$0 sm:$0xff]  ;;  %s5233_s17 = smov [#allocation2]  }
 0x4a9   : > { %v3404_v7 = vmul.f32 0.01, %v3372_v42  ;;  %4782 = vmatprep.mubr.msk.f32.mxu1 %vm2963_vm11, %v3417_v30  ;;  %vm3388_vm10 = vcmp.gt.f32.partialorder %v3372_v42, 0.0  ;;  %s5141_s14 = sshll.u32 %s5233_s17, 4  ;;  %s5142_s14 = int_to_ptr.vmem [resolvable:$false] %s5141_s14 }
 0x4aa   : > { %vm3387_vm12 = vcmp.gt.f32.partialorder %v3371_v19, 0.0  ;;  %v3403_v46 = vmul.f32 0.01, %v3371_v19  ;;  %4783 = vmatmul.mubr.msk.f32.gmra.mrb[84].mxu1 %vm2963_vm11, %v3418_v24  ;;  %s5143_s15 = scalar_lea.vmem %s5142_s14, 4096  ;;  %p5144_p5 = scmp.lt.s32.totalorder %s6514_s22, %s5142_s14 }
 0x4ab   : > { %v3420_v40 = vsel %vm3388_vm10, %v3372_v42, %v3404_v7  ;;  %p5145_p6 = scmp.lt.s32.totalorder %s5143_s15, %s5137_s28 }
 0x4ac   : > { %v3419_v27 = vsel %vm3387_vm12, %v3371_v19, %v3403_v46 }
 0x4ad   : > { %4785 = vmatprep.mubr.msk.f32.mxu1 %vm2963_vm11, %v3419_v27  ;;  %p5146_p7 = por %p5145_p6, %p5144_p5 }
 0x4ae   : > { %4786 = vmatmul.mubr.msk.f32.gmra.mrb[86].mxu1 %vm2963_vm11, %v3420_v40 }
 0x4af   : > { %p5147_p9 = pnand %p5146_p7, %p5140_p4 }
 0x565   : > { %v4766_v33 = vpop.f32.mrb[72].mxu1 }
 0x566   : > { %v3550_v14 = vadd.f32 %v4766_v33, %v4011_v25  ;;  %v3544_v8 = vpop.f32.mrb[73].mxu1 }
 0x567   : > { %v3545_v36 = vadd.f32 %v4011_v25, %v3544_v8 }
 0x568   : > { %3624 = vst [vmem:[%s6490_s27 + $0x8] sm:$0xff] %v3550_v14 }
 0x569   : > { %3623 = vst [vmem:[%s6490_s27] sm:$0xff] %v3545_v36  ;;  %v4769_v38 = vpop.f32.mrb[74].mxu1 }
 0x56a   : > { %v3560_v43 = vadd.f32 %v4769_v38, %v4011_v25  ;;  %v3554_v9 = vpop.f32.mrb[75].mxu1 }
 0x56b   : > { %v3555_v32 = vadd.f32 %v4011_v25, %v3554_v9 }
 0x56c   : > { %3626 = vst [vmem:[%s6490_s27 + $0x18] sm:$0xff] %v3560_v43 }
 0x56d   : > { %3625 = vst [vmem:[%s6490_s27 + $0x10] sm:$0xff] %v3555_v32  ;;  %v4772_v44 = vpop.f32.mrb[76].mxu1 }
 0x56e   : > { %v3570_v48 = vadd.f32 %v4772_v44, %v4011_v25  ;;  %v3564_v52 = vpop.f32.mrb[77].mxu1 }
 0x56f   : > { %v3565_v39 = vadd.f32 %v4011_v25, %v3564_v52 }
 0x570   : > { %3628 = vst [vmem:[%s6490_s27 + $0x28] sm:$0xff] %v3570_v48 }
 0x571   : > { %3627 = vst [vmem:[%s6490_s27 + $0x20] sm:$0xff] %v3565_v39  ;;  %v4775_v56 = vpop.f32.mrb[78].mxu1 }
 0x572   : > { %v3580_v57 = vadd.f32 %v4775_v56, %v4011_v25  ;;  %v3574_v61 = vpop.f32.mrb[79].mxu1 }
 0x573   : > { %v3575_v62 = vadd.f32 %v4011_v25, %v3574_v61 }
 0x574   : > { %3630 = vst [vmem:[%s6490_s27 + $0x38] sm:$0xff] %v3580_v57 }
 0x575   : > { %3629 = vst [vmem:[%s6490_s27 + $0x30] sm:$0xff] %v3575_v62  ;;  %v4778_v1 = vpop.f32.mrb[80].mxu1 }
 0x576   : > { %v3590_v58 = vadd.f32 %v4778_v1, %v4011_v25  ;;  %v3584_v3 = vpop.f32.mrb[81].mxu1 }
 0x577   : > { %v3585_v20 = vadd.f32 %v4011_v25, %v3584_v3 }
 0x578   : > { %3632 = vst [vmem:[%s6490_s27 + $0x48] sm:$0xff] %v3590_v58 }
 0x579   : > { %3631 = vst [vmem:[%s6490_s27 + $0x40] sm:$0xff] %v3585_v20  ;;  %v4781_v4 = vpop.f32.mrb[82].mxu1 }
 0x57a   : > { %v3600_v54 = vadd.f32 %v4781_v4, %v4011_v25  ;;  %v3594_v16 = vpop.f32.mrb[83].mxu1 }
 0x57b   : > { %v3595_v37 = vadd.f32 %v4011_v25, %v3594_v16 }
 0x57c   : > { %3634 = vst [vmem:[%s6490_s27 + $0x58] sm:$0xff] %v3600_v54 }
 0x57d   : > { %3633 = vst [vmem:[%s6490_s27 + $0x50] sm:$0xff] %v3595_v37  ;;  %v4784_v21 = vpop.f32.mrb[84].mxu1 }
 0x57e   : > { %v3610_v50 = vadd.f32 %v4784_v21, %v4011_v25  ;;  %v3604_v0 = vpop.f32.mrb[85].mxu1 }
 0x57f   : > { %v3605_v60 = vadd.f32 %v4011_v25, %v3604_v0 }
 0x580   : > { %3636 = vst [vmem:[%s6490_s27 + $0x68] sm:$0xff] %v3610_v50 }
 0x581   : > { %3635 = vst [vmem:[%s6490_s27 + $0x60] sm:$0xff] %v3605_v60  ;;  %v4787_v22 = vpop.f32.mrb[86].mxu1 }
 0x582   : > { %v3620_v55 = vadd.f32 %v4787_v22, %v4011_v25  ;;  %v3614_v63 = vpop.f32.mrb[87].mxu1 }
 0x583   : > { %v3615_v6 = vadd.f32 %v4011_v25, %v3614_v63 }
 0x584   : > { %3638 = vst [vmem:[%s6490_s27 + $0x78] sm:$0xff] %v3620_v55 }
 0x585   : > { %3637 = vst [vmem:[%s6490_s27 + $0x70] sm:$0xff] %v3615_v6 }
 0x586   : > { %5150 = shalt.err (!%p5147_p9)
}
 0x587   : > { %s5151_s24 = scalar_lea.hbm %s6511_s21, 2048  ;;  %s5155_s16 = scalar_lea.hbm %s6624_s29, 16384 }
 0x588   : > { %p5152_p10 = scmp.ne.s32.totalorder %s6511_s21, %s5151_s24  ;;  %p5156_p13 = scmp.lt.u32.totalorder %s6511_s21, %s6624_s29 }
 0x589   : > { %p5157_p0 = scmp.lt.u32.totalorder %s5155_s16, %s5151_s24  ;;  %p5159_p2 = scmp.lt.u32.totalorder %s5151_s24, %s6511_s21 }
 0x58a   : > { %p5153_p11 = pnand %p5152_p10, %p5367_p3 }
 0x58b   : > { %p5158_p1 = por %p5157_p0, %p5156_p13 }
 0x58c   : > { %p5154_p12 = pneg %p5153_p11 }
 0x58d   : > { %p5160_p4 = por %p5159_p2, %p5158_p1 }
 0x58f   : > { %p5161_p5 = pnand %p5160_p4, %p5154_p12 }
 0x591   : > { %5164 = shalt.err (!%p5161_p5)
}
 0x592   : > { %s5234_s28 = smov 128   ;;  %s5235_s17 = smov 8  }
 0x593   : > { %5064 = dma.vmem_to_hbm [thread:$0]  (%p5367_p3), %s6514_s22, 2048, %s6511_s21, %s6520_s30, %s5234_s28, %s5234_s28, %s5235_s17  }
 0x594 PF: > { %s6625_s14 = sld [smem:[#allocation5_spill]]  ;;  %p5070_p6 = scmp.ge.s32.totalorder %s5231_s25, 2 }
 0x596   : > { %p5067_p7 = pnand %p5070_p6, %p5376_p8 }
 0x59a   : > { %s3670_s27 = sand.u32 1, %s6625_s14  }
 0x59b   : > { %s3671_s24 = scalar_lea.sflag [#allocation3], %s3670_s27 }
 0x59c   : > { %5198 = dma.done.wait (!%p5067_p7), %s3671_s24, 2048  }
 0x59d   : > { %5200 = vsyncadd (!%p5067_p7), %s3671_s24, 4294965248  ;;  %s28_s25 = sadd.s32 1, %s5231_s25   ;;  %s6627_s16 = sld [smem:[#allocation6_spill]] }
 0x59e   : > { %p25_p9 = scmp.ge.s32.totalorder %s28_s25, 10   ;;  %s6628_s20 = sld [smem:[#allocation13_spill]] }
 0x59f   : > { %s6629_s21 = sld [smem:[#allocation7_spill]]  ;;  %s6630_s22 = sld [smem:[#allocation8_spill]] }
 0x5a0   : > { %s6631_s23 = sld [smem:[#allocation9_spill]]  ;;  %s6632_s24 = sld [smem:[#allocation11_spill]] }
 0x5a1   : > { %s6633_s18 = smov %s5207_s19  ;;  %27 = sbr.rel (!%p25_p9) target bundleno = 8 (0x8), region = 124 }
 0x5a3   : > { %s6634_s19 = smov %s6627_s16 }
 0x5a8   :  { %3676 = vsyncpa [#allocation3], 1 }
 0x5a9   :  { %3678 = vsyncpa [#allocation3 + $0x1], 1 }

</bundles_post_ra>
